<compile_context>
chip_gen: v6e
topology: v6e:2x2x1
jax: 0.10.0
libtpu: 0.0.40
codegen_flags: <defaults>
</compile_context>

<pallas_src>
import math

import numpy as np
import jax
import jax.numpy as jnp
from jax.experimental import pallas as pl
from jax.experimental.pallas import tpu as pltpu


def _cdiv(a, b):
    return (a + b - 1) // b


def rgcn_kernel(tile_data_ref, tile_block_ref, tile_rel_ref,
                tile_first_ref, tile_last_ref,
                h_src_ref, dst_ref, w_ref, inv_deg_ref, bias_ref,
                out_ref):
    # tile_data / tile_block / tile_rel are consumed by the index_maps only.
    del tile_data_ref, tile_block_ref, tile_rel_ref
    s = pl.program_id(0)                       # shard (TensorCore half)
    t = pl.program_id(1)                       # edge tile within the shard
    g = s * pl.num_programs(1) + t             # flat tile id into SMEM tables
    tile_n = out_ref.shape[0]
    tile_e = h_src_ref.shape[0]

    @pl.when(tile_first_ref[g] == 1)
    def _init():
        out_ref[...] = jnp.zeros_like(out_ref)

    # Block-local one-hot scatter from in-block dst ids (padding edges carry
    # id == TILE_N and never match).  Aggregate-then-transform, bf16 on MXU.
    dst_loc = dst_ref[0]                                          # (1, TILE_E)
    row_ids = jax.lax.broadcasted_iota(jnp.int32, (tile_n, tile_e), 0)
    scatter = jnp.where(row_ids == dst_loc, 1.0, 0.0).astype(jnp.bfloat16)
    agg = jnp.dot(scatter, h_src_ref[...],
                  preferred_element_type=jnp.float32)             # (TILE_N, in_pad)
    out_ref[...] += jnp.dot(agg.astype(jnp.bfloat16), w_ref[0],
                            preferred_element_type=jnp.float32)   # (TILE_N, out_pad)

    @pl.when(tile_last_ref[g] == 1)
    def _finalize():
        h = out_ref[...] * inv_deg_ref[...] + bias_ref[...]       # mean + bias
        out_ref[...] = jnp.maximum(h, 0.0)                        # ReLU


def preprocess_graph(src, dst, rel_type, num_nodes, num_rels,
                     tile_n, tile_e, num_shards=2):
    """Host-side graph bookkeeping (analogue of DGL graph construction):
    group edges by (dst node block, relation), pad every group to whole TILE_E
    tiles, balance node blocks over `num_shards` TensorCore shards, and build
    the scalar-prefetch tables that drive the kernel's index_maps."""
    src = np.asarray(src).astype(np.int64)
    dst = np.asarray(dst).astype(np.int64)
    rel = np.asarray(rel_type).astype(np.int64)

    num_node_blocks = _cdiv(num_nodes, tile_n)

    # Data tile 0: shared all-padding tile (zero h row, no dst match).  Used by
    # node blocks with no in-edges and by shard-length padding tiles.
    gather_chunks = [np.full(tile_e, num_nodes, dtype=np.int32)]
    dst_chunks = [np.full(tile_e, tile_n, dtype=np.int32)]

    # Per node block: list of (data_tile_idx, relation) descriptors.
    block_tiles = []
    dst_block = dst // tile_n
    for nb in range(num_node_blocks):
        tiles = []
        for r in range(num_rels):
            sel = np.nonzero((dst_block == nb) & (rel == r))[0]
            if sel.size == 0:
                continue
            n_tiles = _cdiv(int(sel.size), tile_e)
            padded = n_tiles * tile_e
            g = np.full(padded, num_nodes, dtype=np.int32)   # -> zero row of h
            g[:sel.size] = src[sel]
            d = np.full(padded, tile_n, dtype=np.int32)      # -> never scattered
            d[:sel.size] = dst[sel] - nb * tile_n
            for k in range(n_tiles):
                gather_chunks.append(g[k * tile_e:(k + 1) * tile_e])
                dst_chunks.append(d[k * tile_e:(k + 1) * tile_e])
                tiles.append((len(gather_chunks) - 1, r))
        if not tiles:                       # block with no in-edges -> relu(bias)
            tiles.append((0, 0))
        block_tiles.append(tiles)

    # Greedy balance of node blocks over shards by tile count (v7x: 2 TCs).
    order = sorted(range(num_node_blocks), key=lambda nb: -len(block_tiles[nb]))
    shard_blocks = [[] for _ in range(num_shards)]
    shard_load = [0] * num_shards
    for nb in order:
        s = int(np.argmin(shard_load))
        shard_blocks[s].append(nb)
        shard_load[s] += len(block_tiles[nb])
    tiles_per_shard = max(1, max(shard_load))

    total = num_shards * tiles_per_shard
    tile_data = np.zeros(total, dtype=np.int32)
    tile_block = np.zeros(total, dtype=np.int32)
    tile_rel = np.zeros(total, dtype=np.int32)
    tile_first = np.zeros(total, dtype=np.int32)
    tile_last = np.zeros(total, dtype=np.int32)
    for s in range(num_shards):
        pos = s * tiles_per_shard
        for nb in shard_blocks[s]:
            tiles = block_tiles[nb]
            for k, (didx, r) in enumerate(tiles):
                tile_data[pos] = didx
                tile_block[pos] = nb
                tile_rel[pos] = r
                tile_first[pos] = 1 if k == 0 else 0
                tile_last[pos] = 1 if k == len(tiles) - 1 else 0
                pos += 1
        while pos < (s + 1) * tiles_per_shard:       # shard-length padding tiles
            tile_data[pos] = 0
            tile_block[pos] = num_node_blocks + s    # per-shard discarded block
            tile_rel[pos] = 0
            tile_first[pos] = 1                      # zero the buffer (no garbage)
            tile_last[pos] = 0
            pos += 1

    gather_idx = np.concatenate(gather_chunks)
    num_data_tiles = len(dst_chunks)
    dst_local = np.stack(dst_chunks).reshape(num_data_tiles, 1, tile_e)

    n_out = (num_node_blocks + num_shards) * tile_n
    deg = np.bincount(dst, minlength=num_nodes).astype(np.float32)
    inv_deg = np.zeros((n_out, 1), dtype=np.float32)
    inv_deg[:num_nodes, 0] = 1.0 / np.maximum(deg, 1.0)

    return dict(
        gather_idx=jnp.asarray(gather_idx, dtype=jnp.int32),
        dst_local=jnp.asarray(dst_local, dtype=jnp.int32),
        tile_data=jnp.asarray(tile_data),
        tile_block=jnp.asarray(tile_block),
        tile_rel=jnp.asarray(tile_rel),
        tile_first=jnp.asarray(tile_first),
        tile_last=jnp.asarray(tile_last),
        inv_deg=jnp.asarray(inv_deg),
        num_node_blocks=num_node_blocks,
        tiles_per_shard=tiles_per_shard,
        num_shards=num_shards,
        n_out=n_out,
    )


def rgcn_layer_forward(h, src, dst, rel_type, weight, bias, num_nodes,
                       tile_n=128, tile_e=128, num_shards=2):
    num_rels, in_feat, out_feat = weight.shape
    in_pad = _cdiv(in_feat, 128) * 128                 # lane-dense contraction
    out_pad = _cdiv(out_feat, 128) * 128               # lane-dense output

    meta = preprocess_graph(src, dst, rel_type, num_nodes, num_rels,
                            tile_n, tile_e, num_shards)
    tiles_per_shard = meta["tiles_per_shard"]
    n_out = meta["n_out"]

    # Parameters: bf16 weights with both dims padded to 128 lanes; f32 bias.
    # TODO(synk): optionally keep W fully resident in VMEM (constant index_map +
    # dynamic rel index in-kernel) on v5e/v6e when 2*num_rels*in_pad*out_pad fits.
    w_p = jnp.zeros((num_rels, in_pad, out_pad), jnp.float32)
    w_p = w_p.at[:, :in_feat, :out_feat].set(weight).astype(jnp.bfloat16)
    b_p = jnp.zeros((1, out_pad), jnp.float32).at[0, :out_feat].set(bias)

    # Gather source features in edge-tile order.  Cast to bf16 BEFORE the
    # gather so the (E_pad, in_pad) HBM round-trip is half-width.
    # TODO(synk): for very large E, move this gather into the kernel (resident
    # h in VMEM + scalar-prefetched src table) to drop the round-trip entirely.
    h_pad = jnp.zeros((num_nodes + 1, in_pad), jnp.bfloat16)
    h_pad = h_pad.at[:num_nodes, :in_feat].set(h.astype(jnp.bfloat16))
    h_src = jnp.take(h_pad, meta["gather_idx"], axis=0)

    def _g(s, t):
        return s * tiles_per_shard + t

    def hsrc_map(s, t, td, tb, tr, tf, tl):
        return (td[_g(s, t)], 0)

    def dst_map(s, t, td, tb, tr, tf, tl):
        return (td[_g(s, t)], 0, 0)

    def w_map(s, t, td, tb, tr, tf, tl):
        return (tr[_g(s, t)], 0, 0)

    def inv_map(s, t, td, tb, tr, tf, tl):
        return (tb[_g(s, t)], 0)

    def bias_map(s, t, *_):
        return (0, 0)

    def out_map(s, t, td, tb, tr, tf, tl):
        return (tb[_g(s, t)], 0)

    grid_spec = pltpu.PrefetchScalarGridSpec(
        num_scalar_prefetch=5,
        grid=(num_shards, tiles_per_shard),
        in_specs=[
            pl.BlockSpec((tile_e, in_pad), hsrc_map),             # h_src (bf16)
            pl.BlockSpec((1, 1, tile_e), dst_map),                # in-block dst ids
            pl.BlockSpec((1, in_pad, out_pad), w_map),            # W[rel] (bf16)
            pl.BlockSpec((tile_n, 1), inv_map),                   # inv_deg (f32)
            pl.BlockSpec((1, out_pad), bias_map),                 # bias (f32)
        ],
        out_specs=pl.BlockSpec((tile_n, out_pad), out_map),
    )

    out = pl.pallas_call(
        rgcn_kernel,
        out_shape=jax.ShapeDtypeStruct((n_out, out_pad), jnp.float32),
        grid_spec=grid_spec,
        compiler_params=pltpu.CompilerParams(
            dimension_semantics=("parallel", "arbitrary"),
            vmem_limit_bytes=48 * 1024 * 1024,   # safe on v7x (64 MiB physical)
        ),
    )(meta["tile_data"], meta["tile_block"], meta["tile_rel"],
      meta["tile_first"], meta["tile_last"],
      h_src, meta["dst_local"], w_p, meta["inv_deg"], b_p)

    return out[:num_nodes, :out_feat]


def reference_forward(h, src, dst, rel_type, weight, bias, num_nodes):
    """Pure-JAX f32 reference of the module semantics (sanity check)."""
    h_src = h[src]                                                 # (E, in_feat)
    w_e = weight[rel_type]                                         # (E, in, out)
    msg = jnp.einsum("ei,eio->eo", h_src, w_e)                     # (E, out)
    agg = jnp.zeros((num_nodes, weight.shape[2]), jnp.float32).at[dst].add(msg)
    deg = jnp.zeros((num_nodes, 1), jnp.float32).at[dst].add(1.0)
    hm = agg / jnp.maximum(deg, 1.0)
    return jax.nn.relu(hm + bias[None, :])


if __name__ == "__main__":
    key = jax.random.PRNGKey(0)
    k_h, k_w, k_b, k_src, k_dst, k_rel = jax.random.split(key, 6)

    # Small but path-covering shapes: 3 node blocks at tile_n=128 (one partial),
    # multi-tile (block, rel) groups, in_feat padded 48->128, out_feat 160->256.
    num_nodes = 300
    num_edges = 1500
    in_feat = 48
    out_feat = 160
    num_rels = 4

    h = jax.random.normal(k_h, (num_nodes, in_feat), dtype=jnp.float32)
    src = jax.random.randint(k_src, (num_edges,), 0, num_nodes)
    dst = jax.random.randint(k_dst, (num_edges,), 0, num_nodes)
    rel_type = jax.random.randint(k_rel, (num_edges,), 0, num_rels)

    # xavier_uniform_ with gain=calculate_gain('relu')=sqrt(2).
    gain = math.sqrt(2.0)
    bound_w = gain * math.sqrt(6.0 / (in_feat * out_feat + num_rels * out_feat))
    weight = jax.random.uniform(k_w, (num_rels, in_feat, out_feat),
                                jnp.float32, -bound_w, bound_w)
    # TODO(synk): PyTorch's xavier_uniform_ on a 1-D bias is ill-defined; use a
    # deterministic uniform init of matching scale instead.
    bound_b = gain * math.sqrt(6.0 / (2 * out_feat))
    bias = jax.random.uniform(k_b, (out_feat,), jnp.float32, -bound_b, bound_b)

    out = rgcn_layer_forward(h, src, dst, rel_type, weight, bias, num_nodes)
    out = jax.block_until_ready(out)

    ref = reference_forward(h, src, dst, rel_type, weight, bias, num_nodes)
    assert out.shape == (num_nodes, out_feat)
    # bf16 operands on both matmuls + bf16-rounded aggregate -> loose-ish tol.
    assert jnp.allclose(out, ref, atol=2e-2, rtol=2e-2), \
        float(jnp.max(jnp.abs(out - ref)))

    print("KERNEL_OK")
</pallas_src>

<mosaic_0001>
module attributes {stable_mosaic.version = 11 : i64} {
  func.func @rgcn_kernel(%arg0: i32, %arg1: i32, %arg2: memref<24xi32, #tpu.memory_space<smem>>, %arg3: memref<24xi32, #tpu.memory_space<smem>>, %arg4: memref<24xi32, #tpu.memory_space<smem>>, %arg5: memref<24xi32, #tpu.memory_space<smem>>, %arg6: memref<24xi32, #tpu.memory_space<smem>>, %arg7: memref<128x128xbf16, #tpu.memory_space<vmem>>, %arg8: memref<1x1x128xi32, #tpu.memory_space<vmem>>, %arg9: memref<1x128x256xbf16, #tpu.memory_space<vmem>>, %arg10: memref<128x1xf32, #tpu.memory_space<vmem>>, %arg11: memref<1x256xf32, #tpu.memory_space<vmem>>, %arg12: memref<128x256xf32, #tpu.memory_space<vmem>>) attributes {dimension_semantics = [#tpu.dimension_semantics<parallel>, #tpu.dimension_semantics<arbitrary>], iteration_bounds = array<i64: 2, 12>, scalar_prefetch = 5 : i64, scratch_operands = 0 : i64, tpu.core_type = #tpu.core_type<tc>, window_params = [{transform_indices = @transform_0, window_bounds = array<i64: 128, 128>}, {transform_indices = @transform_1, window_bounds = array<i64: 1, 1, 128>}, {transform_indices = @transform_2, window_bounds = array<i64: 1, 128, 256>}, {transform_indices = @transform_3, window_bounds = array<i64: 128, 1>}, {pipeline_mode = #tpu.pipeline_mode<synchronous>, transform_indices = @transform_4, window_bounds = array<i64: 1, 256>}, {transform_indices = @transform_5, window_bounds = array<i64: 128, 256>}]} {
    %c12_i32 = arith.constant 12 : i32
    %0 = arith.muli %arg0, %c12_i32 : i32
    %1 = arith.addi %0, %arg1 : i32
    %2 = arith.index_cast %1 : i32 to index
    %3 = memref.load %arg5[%2] : memref<24xi32, #tpu.memory_space<smem>>
    %c1_i32 = arith.constant 1 : i32
    %4 = arith.cmpi eq, %3, %c1_i32 : i32
    %5 = arith.extui %4 : i1 to i32
    %c0_i32 = arith.constant 0 : i32
    %6 = arith.cmpi ne, %5, %c0_i32 : i32
    scf.if %6 {
      %cst_16 = arith.constant 0.000000e+00 : f32
      %30 = vector.broadcast %cst_16 : f32 to vector<128x256xf32>
      %c0_17 = arith.constant 0 : index
      %c0_18 = arith.constant 0 : index
      %31 = vector.load %arg12[%c0_17, %c0_18] : memref<128x256xf32, #tpu.memory_space<vmem>>, vector<128x256xf32>
      tpu.vector_store %arg12[%c0_17, %c0_18], %30 {strides = array<i32>} : memref<128x256xf32, #tpu.memory_space<vmem>>, vector<128x256xf32>,
    } else {
    }
    %c0 = arith.constant 0 : index
    %c0_0 = arith.constant 0 : index
    %c0_1 = arith.constant 0 : index
    %7 = vector.load %arg8[%c0, %c0_0, %c0_1] : memref<1x1x128xi32, #tpu.memory_space<vmem>>, vector<1x1x128xi32>
    %8 = vector.shape_cast %7 : vector<1x1x128xi32> to vector<1x128xi32>
    %9 = tpu.iota {dimensions = array<i32: 0>} : vector<128x128xi32>
    %10 = vector.broadcast %8 : vector<1x128xi32> to vector<128x128xi32>
    %11 = arith.cmpi eq, %9, %10 : vector<128x128xi32>
    %cst = arith.constant 1.000000e+00 : f32
    %cst_2 = arith.constant 0.000000e+00 : f32
    %12 = vector.broadcast %cst : f32 to vector<128x128xf32>
    %13 = vector.broadcast %cst_2 : f32 to vector<128x128xf32>
    %14 = arith.select %11, %12, %13 : vector<128x128xi1>, vector<128x128xf32>
    %15 = arith.truncf %14 : vector<128x128xf32> to vector<128x128xbf16>
    %c0_3 = arith.constant 0 : index
    %c0_4 = arith.constant 0 : index
    %16 = vector.load %arg7[%c0_3, %c0_4] : memref<128x128xbf16, #tpu.memory_space<vmem>>, vector<128x128xbf16>
    %cst_5 = arith.constant dense<0.000000e+00> : vector<128x128xf32>
    %17 = tpu.matmul %15, %16, %cst_5 {dimension_numbers = #tpu.dot_dimension_numbers<[1], [0], [0], [1], [0, 0, 1, 1], [], []>} : vector<128x128xbf16>, vector<128x128xbf16>, vector<128x128xf32> -> vector<128x128xf32>
    %c0_6 = arith.constant 0 : index
    %c0_7 = arith.constant 0 : index
    %18 = vector.load %arg12[%c0_6, %c0_7] : memref<128x256xf32, #tpu.memory_space<vmem>>, vector<128x256xf32>
    %19 = arith.truncf %17 : vector<128x128xf32> to vector<128x128xbf16>
    %c0_8 = arith.constant 0 : index
    %c0_9 = arith.constant 0 : index
    %c0_10 = arith.constant 0 : index
    %20 = vector.load %arg9[%c0_8, %c0_9, %c0_10] : memref<1x128x256xbf16, #tpu.memory_space<vmem>>, vector<1x128x256xbf16>
    %21 = vector.shape_cast %20 : vector<1x128x256xbf16> to vector<128x256xbf16>
    %cst_11 = arith.constant dense<0.000000e+00> : vector<128x256xf32>
    %22 = tpu.matmul %19, %21, %cst_11 {dimension_numbers = #tpu.dot_dimension_numbers<[1], [0], [0], [1], [0, 0, 1, 1], [], []>} : vector<128x128xbf16>, vector<128x256xbf16>, vector<128x256xf32> -> vector<128x256xf32>
    %23 = arith.addf %18, %22 : vector<128x256xf32>
    %c0_12 = arith.constant 0 : index
    %c0_13 = arith.constant 0 : index
    %24 = vector.load %arg12[%c0_12, %c0_13] : memref<128x256xf32, #tpu.memory_space<vmem>>, vector<128x256xf32>
    tpu.vector_store %arg12[%c0_12, %c0_13], %23 {strides = array<i32>} : memref<128x256xf32, #tpu.memory_space<vmem>>, vector<128x256xf32>,
    %25 = arith.index_cast %1 : i32 to index
    %26 = memref.load %arg6[%25] : memref<24xi32, #tpu.memory_space<smem>>
    %c1_i32_14 = arith.constant 1 : i32
    %27 = arith.cmpi eq, %26, %c1_i32_14 : i32
    %28 = arith.extui %27 : i1 to i32
    %c0_i32_15 = arith.constant 0 : i32
    %29 = arith.cmpi ne, %28, %c0_i32_15 : i32
    scf.if %29 {
      %c0_16 = arith.constant 0 : index
      %c0_17 = arith.constant 0 : index
      %30 = vector.load %arg12[%c0_16, %c0_17] : memref<128x256xf32, #tpu.memory_space<vmem>>, vector<128x256xf32>
      %c0_18 = arith.constant 0 : index
      %c0_19 = arith.constant 0 : index
      %31 = vector.load %arg10[%c0_18, %c0_19] : memref<128x1xf32, #tpu.memory_space<vmem>>, vector<128x1xf32>
      %32 = vector.broadcast %31 : vector<128x1xf32> to vector<128x256xf32>
      %33 = arith.mulf %30, %32 : vector<128x256xf32>
      %c0_20 = arith.constant 0 : index
      %c0_21 = arith.constant 0 : index
      %34 = vector.load %arg11[%c0_20, %c0_21] : memref<1x256xf32, #tpu.memory_space<vmem>>, vector<1x256xf32>
      %35 = vector.broadcast %34 : vector<1x256xf32> to vector<128x256xf32>
      %36 = arith.addf %33, %35 : vector<128x256xf32>
      %cst_22 = arith.constant 0.000000e+00 : f32
      %37 = vector.broadcast %cst_22 : f32 to vector<128x256xf32>
      %38 = arith.maximumf %36, %37 : vector<128x256xf32>
      %c0_23 = arith.constant 0 : index
      %c0_24 = arith.constant 0 : index
      %39 = vector.load %arg12[%c0_23, %c0_24] : memref<128x256xf32, #tpu.memory_space<vmem>>, vector<128x256xf32>
      tpu.vector_store %arg12[%c0_23, %c0_24], %38 {strides = array<i32>} : memref<128x256xf32, #tpu.memory_space<vmem>>, vector<128x256xf32>,
    } else {
    }
    return
  }
  func.func @transform_0(%arg0: i32, %arg1: i32, %arg2: memref<24xi32, #tpu.memory_space<smem>>, %arg3: memref<24xi32, #tpu.memory_space<smem>>, %arg4: memref<24xi32, #tpu.memory_space<smem>>, %arg5: memref<24xi32, #tpu.memory_space<smem>>, %arg6: memref<24xi32, #tpu.memory_space<smem>>) -> (i32, i32) {
    %c12_i32 = arith.constant 12 : i32
    %0 = arith.muli %arg0, %c12_i32 : i32
    %1 = arith.addi %0, %arg1 : i32
    %2 = arith.index_cast %1 : i32 to index
    %3 = memref.load %arg2[%2] : memref<24xi32, #tpu.memory_space<smem>>
    %c0_i32 = arith.constant 0 : i32
    %c0_i32_0 = arith.constant 0 : i32
    return %3, %c0_i32 : i32, i32
  }
  func.func @transform_1(%arg0: i32, %arg1: i32, %arg2: memref<24xi32, #tpu.memory_space<smem>>, %arg3: memref<24xi32, #tpu.memory_space<smem>>, %arg4: memref<24xi32, #tpu.memory_space<smem>>, %arg5: memref<24xi32, #tpu.memory_space<smem>>, %arg6: memref<24xi32, #tpu.memory_space<smem>>) -> (i32, i32, i32) {
    %c12_i32 = arith.constant 12 : i32
    %0 = arith.muli %arg0, %c12_i32 : i32
    %1 = arith.addi %0, %arg1 : i32
    %2 = arith.index_cast %1 : i32 to index
    %3 = memref.load %arg2[%2] : memref<24xi32, #tpu.memory_space<smem>>
    %c0_i32 = arith.constant 0 : i32
    %c0_i32_0 = arith.constant 0 : i32
    %c0_i32_1 = arith.constant 0 : i32
    return %3, %c0_i32, %c0_i32_0 : i32, i32, i32
  }
  func.func @transform_2(%arg0: i32, %arg1: i32, %arg2: memref<24xi32, #tpu.memory_space<smem>>, %arg3: memref<24xi32, #tpu.memory_space<smem>>, %arg4: memref<24xi32, #tpu.memory_space<smem>>, %arg5: memref<24xi32, #tpu.memory_space<smem>>, %arg6: memref<24xi32, #tpu.memory_space<smem>>) -> (i32, i32, i32) {
    %c12_i32 = arith.constant 12 : i32
    %0 = arith.muli %arg0, %c12_i32 : i32
    %1 = arith.addi %0, %arg1 : i32
    %2 = arith.index_cast %1 : i32 to index
    %3 = memref.load %arg4[%2] : memref<24xi32, #tpu.memory_space<smem>>
    %c0_i32 = arith.constant 0 : i32
    %c0_i32_0 = arith.constant 0 : i32
    %c0_i32_1 = arith.constant 0 : i32
    return %3, %c0_i32, %c0_i32_0 : i32, i32, i32
  }
  func.func @transform_3(%arg0: i32, %arg1: i32, %arg2: memref<24xi32, #tpu.memory_space<smem>>, %arg3: memref<24xi32, #tpu.memory_space<smem>>, %arg4: memref<24xi32, #tpu.memory_space<smem>>, %arg5: memref<24xi32, #tpu.memory_space<smem>>, %arg6: memref<24xi32, #tpu.memory_space<smem>>) -> (i32, i32) {
    %c12_i32 = arith.constant 12 : i32
    %0 = arith.muli %arg0, %c12_i32 : i32
    %1 = arith.addi %0, %arg1 : i32
    %2 = arith.index_cast %1 : i32 to index
    %3 = memref.load %arg3[%2] : memref<24xi32, #tpu.memory_space<smem>>
    %c0_i32 = arith.constant 0 : i32
    %c0_i32_0 = arith.constant 0 : i32
    return %3, %c0_i32 : i32, i32
  }
  func.func @transform_4(%arg0: i32, %arg1: i32, %arg2: memref<24xi32, #tpu.memory_space<smem>>, %arg3: memref<24xi32, #tpu.memory_space<smem>>, %arg4: memref<24xi32, #tpu.memory_space<smem>>, %arg5: memref<24xi32, #tpu.memory_space<smem>>, %arg6: memref<24xi32, #tpu.memory_space<smem>>) -> (i32, i32) {
    %c0_i32 = arith.constant 0 : i32
    %c0_i32_0 = arith.constant 0 : i32
    %c0_i32_1 = arith.constant 0 : i32
    return %c0_i32, %c0_i32_0 : i32, i32
  }
  func.func @transform_5(%arg0: i32, %arg1: i32, %arg2: memref<24xi32, #tpu.memory_space<smem>>, %arg3: memref<24xi32, #tpu.memory_space<smem>>, %arg4: memref<24xi32, #tpu.memory_space<smem>>, %arg5: memref<24xi32, #tpu.memory_space<smem>>, %arg6: memref<24xi32, #tpu.memory_space<smem>>) -> (i32, i32) {
    %c12_i32 = arith.constant 12 : i32
    %0 = arith.muli %arg0, %c12_i32 : i32
    %1 = arith.addi %0, %arg1 : i32
    %2 = arith.index_cast %1 : i32 to index
    %3 = memref.load %arg3[%2] : memref<24xi32, #tpu.memory_space<smem>>
    %c0_i32 = arith.constant 0 : i32
    %c0_i32_0 = arith.constant 0 : i32
    return %3, %c0_i32 : i32, i32
  }
}

</mosaic_0001>

<bundles_post_ra>
// kernel: tpu_custom_call.1
= control target key start
LH: loop header
LB: loop body
LE: loop exit
PB: predicated region body
PF: predicated region fallthrough
CT: control target
= control target key end

     0   :  { %s2554_s0 = inlined_call_operand.vmem [shape: s32[24], index: 0, kind: input, shape index: {}]   ;;  %s2555_s5 = inlined_call_operand.hbm [shape: bf16[2688,128], index: 5, kind: input, shape index: {}]   ;;  %s2556_s6 = inlined_call_operand.vmem [shape: s32[21,1,128], index: 6, kind: input, shape index: {}]   ;;  %s2557_s7 = inlined_call_operand.vmem [shape: bf16[4,128,256], index: 7, kind: input, shape index: {}]   ;;  %s2558_s8 = inlined_call_operand.vmem [shape: f32[640,1], index: 8, kind: input, shape index: {}]   ;;  %s2559_s9 = inlined_call_operand.vmem [shape: f32[1,256], index: 9, kind: input, shape index: {}]   ;;  %s2560_s10 = inlined_call_operand.hbm [shape: f32[640,256], index: 10, kind: output, shape index: {}]   ;;  %s2561_s1 = inlined_call_operand.vmem [shape: s32[24], index: 1, kind: input, shape index: {}]   ;;  %s2562_s2 = inlined_call_operand.vmem [shape: s32[24], index: 2, kind: input, shape index: {}]   ;;  %s2563_s3 = inlined_call_operand.vmem [shape: s32[24], index: 3, kind: input, shape index: {}]   ;;  %s2564_s4 = inlined_call_operand.vmem [shape: s32[24], index: 4, kind: input, shape index: {}]  }
   0x1   :  { %2575 = sst [smem:[#allocation25_spill]] %s2555_s5  ;;  %s15_s15 = sshll.u32 %s2554_s0, 4  ;;  %s16_s15 = int_to_ptr.vmem [resolvable:$true] %s15_s15 }
   0x2   :  { %2576 = sst [smem:[#allocation26_spill]] %s2560_s10  ;;  %s19_s18 = sshll.u32 %s2561_s1, 4  ;;  %s20_s18 = int_to_ptr.vmem [resolvable:$true] %s19_s18 }
   0x3   :  { %s1694_s19 = scalar_lea.vmem %s16_s15, 16  ;;  %p1699_p1 = scmp.lt.s32.totalorder %s16_s15, %s16_s15 }
   0x4   :  { %p1695_p0 = scmp.ne.s32.totalorder %s16_s15, %s1694_s19  ;;  %p1700_p2 = scmp.lt.s32.totalorder %s1694_s19, %s1694_s19 }
   0x6   :  { %p1701_p3 = por %p1700_p2, %p1699_p1 }
   0x8   :  { %p1702_p4 = pnand %p1701_p3, %p1695_p0 }
   0xa   :  { %1705 = shalt.err (!%p1702_p4)  }
   0xb   :  { %s1906_s20 = smov [#allocation3]   ;;  %s1706_s21 = scalar_lea.vmem %s20_s18, 16 }
   0xc   :  { %18 = dma.vmem_to_smem %s16_s15, 16, %s1906_s20, [#allocation2] }
   0xd   :  { %p1707_p5 = scmp.ne.s32.totalorder %s20_s18, %s1706_s21  ;;  %p1711_p6 = scmp.lt.s32.totalorder %s20_s18, %s20_s18 }
   0xe   :  { %p1712_p7 = scmp.lt.s32.totalorder %s1706_s21, %s1706_s21 }
  0x10   :  { %p1713_p8 = por %p1712_p7, %p1711_p6 }
  0x12   :  { %p1714_p9 = pnand %p1713_p8, %p1707_p5 }
  0x14   :  { %1717 = shalt.err (!%p1714_p9)  }
  0x15   :  { %s1907_s0 = smov [#allocation4]   ;;  %s23_s23 = sshll.u32 %s2562_s2, 4  ;;  %s24_s23 = int_to_ptr.vmem [resolvable:$true] %s23_s23 }
  0x16   :  { %22 = dma.vmem_to_smem %s20_s18, 16, %s1907_s0, [#allocation2] }
  0x17   :  { %s27_s26 = sshll.u32 %s2563_s3, 4  ;;  %s1718_s27 = scalar_lea.vmem %s24_s23, 16  ;;  %s28_s26 = int_to_ptr.vmem [resolvable:$true] %s27_s26 }
  0x18   :  { %p1719_p10 = scmp.ne.s32.totalorder %s24_s23, %s1718_s27  ;;  %p1723_p11 = scmp.lt.s32.totalorder %s24_s23, %s24_s23 }
  0x19   :  { %p1724_p12 = scmp.lt.s32.totalorder %s1718_s27, %s1718_s27 }
  0x1b   :  { %p1725_p13 = por %p1724_p12, %p1723_p11 }
  0x1d   :  { %p1726_p0 = pnand %p1725_p13, %p1719_p10 }
  0x1f   :  { %1729 = shalt.err (!%p1726_p0)  }
  0x20   :  { %s1908_s28 = smov [#allocation5]   ;;  %s1730_s29 = scalar_lea.vmem %s28_s26, 16 }
  0x21   :  { %26 = dma.vmem_to_smem %s24_s23, 16, %s1908_s28, [#allocation2] }
  0x22   :  { %p1731_p1 = scmp.ne.s32.totalorder %s28_s26, %s1730_s29  ;;  %p1735_p2 = scmp.lt.s32.totalorder %s28_s26, %s28_s26 }
  0x23   :  { %p1736_p3 = scmp.lt.s32.totalorder %s1730_s29, %s1730_s29 }
  0x25   :  { %p1737_p4 = por %p1736_p3, %p1735_p2 }
  0x27   :  { %p1738_p5 = pnand %p1737_p4, %p1731_p1 }
  0x29   :  { %1741 = shalt.err (!%p1738_p5)  }
  0x2a   :  { %s1909_s2 = smov [#allocation6]   ;;  %s31_s11 = sshll.u32 %s2564_s4, 4  ;;  %s32_s11 = int_to_ptr.vmem [resolvable:$true] %s31_s11 }
  0x2b   :  { %30 = dma.vmem_to_smem %s28_s26, 16, %s1909_s2, [#allocation2] }
  0x2c   :  { %s1742_s12 = scalar_lea.vmem %s32_s11, 16  ;;  %p1747_p7 = scmp.lt.s32.totalorder %s32_s11, %s32_s11 }
  0x2d   :  { %p1743_p6 = scmp.ne.s32.totalorder %s32_s11, %s1742_s12  ;;  %p1748_p8 = scmp.lt.s32.totalorder %s1742_s12, %s1742_s12 }
  0x2f   :  { %p1749_p9 = por %p1748_p8, %p1747_p7 }
  0x31   :  { %p1750_p10 = pnand %p1749_p9, %p1743_p6 }
  0x33   :  { %1753 = shalt.err (!%p1750_p10)  }
  0x34   :  { %s1910_s13 = smov [#allocation7]  }
  0x35   :  { %34 = dma.vmem_to_smem %s32_s11, 16, %s1910_s13, [#allocation2] }
  0x36   :  { %1852 = dma.done.wait [#allocation2], 80 }
  0x37   :  { %1853 = vsyncadd [#allocation2], 4294967216 }
  0x38   :  { %36 = sfence }
  0x39   :  { %37 = vsyncpa [#allocation9], 0 }
  0x3a   :  { %39 = vsyncpa [#allocation9 + $0x1], 0 }
  0x3b   :  { %40 = vsyncpa [#allocation10], 0 }
  0x3c   :  { %42 = vsyncpa [#allocation10 + $0x1], 0  ;;  %s1991_s14 = smov 0   ;;  %s1993_s4 = smov 0  }
  0x3d   :  { %s1995_s15 = smov 0   ;;  %s1997_s16 = smov 0  }
  0x3e   :  { %s1999_s17 = smov 0   ;;  %s2001_s18 = smov 0  }
  0x3f   :  { %s2003_s19 = smov 0   ;;  %s2005_s20 = smov 0  }
  0x40   :  { %s2007_s21 = smov 0   ;;  %s2009_s0 = smov 0  }
  0x41   :  { %s2011_s1 = smov 0  }
  0x42 LB: > { %2577 = sst [smem:[#allocation18_spill]] %s1864_s14  ;;  %s1408_s22 = sadd.s32 4294967295, %s1904_s1   ;;  %s1904_s1 = sphi %s2011_s1, %s48_s1   ;;  %s1900_s0 = sphi %s2009_s0, %s2606_s0   ;;  %s1896_s21 = sphi %s2007_s21, %s2605_s21   ;;  %s1892_s20 = sphi %s2005_s20, %s2604_s20   ;;  %s1888_s19 = sphi %s2003_s19, %s2603_s19   ;;  %s1884_s18 = sphi %s2001_s18, %s2612_s18   ;;  %s1880_s17 = sphi %s1999_s17, %s2611_s17   ;;  %s1876_s16 = sphi %s1997_s16, %s2610_s16   ;;  %s1872_s15 = sphi %s1995_s15, %s2609_s15   ;;  %s1868_s4 = sphi %s1993_s4, %s2608_s4   ;;  %s1864_s14 = sphi %s1991_s14, %s2607_s14  }
  0x43   : > { %2578 = sst [smem:[#allocation19_spill]] %s1896_s21  ;;  %s57_s23 = sadd.s32 1, %s1896_s21 }
  0x44   : > { %2579 = sst [smem:[#allocation20_spill]] %s1900_s0  ;;  %p58_p11 = scmp.ge.s32.totalorder %s57_s23, 12 }
  0x45   : > { %s60_s24 = sadd.s32 1, %s1900_s0  ;;  %s1409_s25 = sadd.s32 4294967294, %s1904_s1  }
  0x46   : > { %s64_s26 = smul.u32 12, %s1900_s0  ;;  %p80_p12 = scmp.ne.s32.totalorder %s1884_s18, %s1880_s17 }
  0x47   : > { %s2614_s24 = smov (!%p58_p11, %s60_s24), %s1900_s0  ;;  %s2616_s23 = smov (%p58_p11, %s57_s23), 0 }
  0x48   : > { %2580 = sst [smem:[#allocation21_spill]] %s2616_s23  ;;  %p62_p13 = scmp.ge.s32.totalorder %s2614_s24, 2 }
  0x49   : > { %s2056_s28 = sadd.s32 %s1896_s21, %s64_s26  ;;  %p81_p0 = scmp.eq.s32.totalorder %s1904_s1, 0 }
  0x4a   : > { %p86_p1 = scmp.ne.s32.totalorder %s1880_s17, %s1876_s16  ;;  %s2618_s24 = smov (%p62_p13, %s2614_s24), 0 }
  0x4b   : > { %2581 = sst [smem:[#allocation22_spill]] %s2618_s24  ;;  %p87_p2 = scmp.eq.s32.totalorder %s1408_s22, 0 }
  0x4c   : > { %s66_s29 = sld [smem:[#allocation3 + %s2056_s28]]  ;;  %s67_s2 = smul.u32 12, %s2618_s24 }
  0x4d   : > { %s215_s3 = sld [smem:[#allocation4 + %s2056_s28]]  ;;  %p2065_p3 = por %p87_p2, %p86_p1 }
  0x4e   : > { %p232_p4 = scmp.ne.s32.totalorder %s1872_s15, %s1868_s4  ;;  %s68_s11 = sadd.s32 %s67_s2, %s2616_s23 }
  0x4f   : > { %s2582_s30 = scalar_select %p2065_p3, 1, 0 }
  0x50   : > { %p233_p5 = scmp.eq.s32.totalorder %s1408_s22, 23  ;;  %s69_s12 = sld [smem:[#allocation3 + %s68_s11]] }
  0x51   : > { %p238_p6 = scmp.ne.s32.totalorder %s1868_s4, %s1864_s14  ;;  %s218_s13 = sld [smem:[#allocation4 + %s68_s11]] }
  0x52   : > { %p2074_p7 = por %p233_p5, %p232_p4  ;;  %p239_p8 = scmp.eq.s32.totalorder %s1409_s25, 23 }
  0x53   : > { %p2083_p9 = por %p81_p0, %p80_p12  ;;  %s262_s22 = sand.u32 1, %s1884_s18  }
  0x54   : > { %s2583_s16 = scalar_select %p2074_p7, 1, 0 }
  0x55   : > { %p2088_p10 = por %p239_p8, %p238_p6  ;;  %p1557_p11 = scmp.lt.s32.totalorder %s1904_s1, 24 }
  0x56   : > { %s222_s11 = sadd.s32 1, %s1872_s15  ;;  %s1412_s27 = sshll.u32 %s262_s22, 6 }
  0x57   : > { %s2585_s2 = scalar_select %p2088_p10, 1, 0 }
  0x58   : > { %s70_s25 = ssub.s32 %s66_s29, %s69_s12  ;;  %p2096_p13 = pnand %p1557_p11, %p2083_p9 }
  0x59   : > { %2586 = sst [smem:[#allocation23_spill]] %s2585_s2  ;;  %p71_p12 = scmp.eq.s32.totalorder %s70_s25, 0 }
  0x5a   : > { %s219_s23 = ssub.s32 %s215_s3, %s218_s13  ;;  %s2588_s0 = sadd.s32 1, %s1884_s18 }
  0x5b   : > { %p220_p0 = scmp.eq.s32.totalorder %s219_s23, 0  ;;  %s2620_s28 = smov (!%p2083_p9, %s2056_s28), 0 }
  0x5c   : > { %s2103_s21 = scalar_select %p71_p12, %s1884_s18, %s2588_s0  }
  0x5d   : > { %s2106_s14 = scalar_select %p220_p0, %s1872_s15, %s222_s11  }
  0x5e   : > { %2589 = sst [smem:[#allocation24_spill]] %s2103_s21  ;;  %s2624_s28 = smov (!%p1557_p11, %s2620_s28), 0 }
  0x5f   : > { %s1539_s2 = scalar_select %p2083_p9, [#allocation3], [#allocation12] }
  0x60   : > { %s266_s12 = scalar_lea.vmem [#allocation8], %s1412_s27  ;;  %p1415_p1 = scmp.ge.s32.totalorder %s1904_s1, 1 }
  0x61   : > { %s2622_s2 = smov (!%p1557_p11, %s1539_s2), [#allocation14]  ;;  %s276_s10 = sshll.u32 %s266_s12, 4  ;;  %s2115_s10 = int_to_ptr.vmem [resolvable:$true] %s276_s10 }
  0x62   : > { %s269_s29 = sld [smem:[%s2622_s2 + %s2624_s28]]  ;;  %p325_p2 = scmp.lt.s32.totalorder %s1904_s1, 25 }
  0x63   : > { %s2591_s5 = sld [smem:[#allocation25_spill]]  ;;  %s2126_s28 = scalar_lea.sflag [#allocation9], %s262_s22 }
  0x64   : > { %p2117_p4 = pnand %p1415_p1, %p325_p2  ;;  %p1756_p6 = pneg %p2096_p13 }
  0x66   : > { %s2590_s23 = scalar_select %p2117_p4, 1, 0 }
  0x68   : > { %s1471_s0 = sshll.u32 %s269_s29, 10 }
  0x69   : > { %s2124_s26 = scalar_lea.hbm %s2591_s5, %s1471_s0  ;;  %s1759_s25 = scalar_lea.hbm %s2591_s5, 21504 }
  0x6a   : > { %s1754_s27 = scalar_lea.hbm %s2124_s26, 1024  ;;  %p1760_p11 = scmp.lt.s32.totalorder %s2124_s26, %s2591_s5 }
  0x6b   : > { %p1755_p5 = scmp.ne.s32.totalorder %s2124_s26, %s1754_s27  ;;  %p1761_p12 = scmp.lt.s32.totalorder %s1759_s25, %s1754_s27 }
  0x6d   : > { %p1757_p8 = pnand %p1756_p6, %p1755_p5  ;;  %p1762_p0 = por %p1761_p12, %p1760_p11 }
  0x6f   : > { %p1758_p9 = pneg %p1757_p8 }
  0x71   : > { %p1763_p1 = pnand %p1762_p0, %p1758_p9 }
  0x73   : > { %1766 = shalt.err (!%p1763_p1)
}
  0x74   : > { %s1767_s22 = scalar_lea.vmem %s2115_s10, 1024  ;;  %s1911_s0 = smov [#allocation8]  }
  0x75   : > { %p1768_p2 = scmp.ne.s32.totalorder %s2115_s10, %s1767_s22  ;;  %s1772_s3 = sshll.u32 %s1911_s0, 4  ;;  %s1773_s3 = int_to_ptr.vmem [resolvable:$false] %s1772_s3 }
  0x76   : > { %s1774_s13 = scalar_lea.vmem %s1773_s3, 2048  ;;  %p1775_p8 = scmp.lt.s32.totalorder %s2115_s10, %s1773_s3 }
  0x77   : > { %p1770_p10 = pnand %p1768_p2, %p1756_p6  ;;  %p1776_p7 = scmp.lt.s32.totalorder %s1774_s13, %s1767_s22 }
  0x79   : > { %p1771_p5 = pneg %p1770_p10  ;;  %p1777_p3 = por %p1776_p7, %p1775_p8 }
  0x7b   : > { %p1778_p4 = pnand %p1777_p3, %p1771_p5 }
  0x7d   : > { %1781 = shalt.err (!%p1778_p4)
}
  0x7e   : > { %s1912_s27 = smov 64   ;;  %s1913_s2 = smov 4  }
  0x7f   : > { %1552 = dma.hbm_to_vmem [thread:$0]  (!%p2096_p13), %s2124_s26, 1024, %s2115_s10, %s2126_s28, %s1912_s27, %s1912_s27, %s1913_s2  }
  0x80   : > { %p2592_p6 = scmp.ne.s32.totalorder %s2590_s23, 0 }
  0x81   : > { %s331_s11 = sand.u32 (!%p2592_p6), 1, %s1880_s17   ;;  %p2593_p3 = scmp.ne.s32.totalorder (!%p2592_p6), %s2582_s30, 0 }
  0x82   : > { %329 = sbr.rel (%p2592_p6) target bundleno = 849 (0x351), region = 40  ;;  %s1416_s25 = sshll.u32 (!%p2592_p6), %s331_s11, 6 }
  0x83   : > { %s332_s29 = scalar_lea.sflag (!%p2592_p6), [#allocation9], %s331_s11  ;;  %s2150_s12 = scalar_lea.vmem (!%p2592_p6), [#allocation8], %s1416_s25 }
  0x87   : > { %1855 = dma.done.wait (%p2593_p3), %s332_s29, 1024  }
  0x88   : > { %1857 = vsyncadd (%p2593_p3), %s332_s29, 4294966272  ;;  %s388_s10 = smul.u32 12, %s1892_s20  ;;  %s2574_s24 = sand.u32 1, %s1868_s4  }
  0x89   : > { %s1417_s23 = sshll.u32 %s2574_s24, 8 }
  0x8a   : > { %s2161_s26 = sadd.s32 %s1888_s19, %s388_s10  ;;  %s2183_s21 = scalar_lea.vmem [#allocation11], %s1417_s23 }
  0x8b   : > { %s390_s28 = sld [smem:[#allocation3 + %s2161_s26]] }
  0x8c   : > { %s399_s22 = sld [smem:[#allocation5 + %s2161_s26]] }
  0x8d   : > { %s410_s0 = sld [smem:[#allocation4 + %s2161_s26]] }
  0x8e   : > { %s427_s3 = sld [smem:[#allocation6 + %s2161_s26]] }
  0x91   : > { %p391_p7 = scmp.lt.s32.totalorder %s390_s28, 20 }
  0x92   : > { %p400_p10 = scmp.lt.s32.totalorder %s399_s22, 3 }
  0x93   : > { %s2626_s28 = smov (!%p391_p7, %s390_s28), 20  ;;  %s1420_s19 = sshll.u32 %s410_s0, 4 }
  0x94   : > { %s2628_s22 = smov (!%p400_p10, %s399_s22), 3  ;;  %s393_s13 = scalar_lea.vmem %s2556_s6, %s2626_s28 }
  0x95   : > { %s1472_s27 = sshll.u32 %s2628_s22, 7  ;;  %p412_p13 = scmp.lt.s32.totalorder %s1420_s19, 79 }
  0x96   : > { %s2176_s25 = scalar_lea.vmem %s2557_s7, %s1472_s27  ;;  %p1422_p4 = scmp.ne.s32.totalorder %s427_s3, 1 }
  0x97   : > { %s2630_s19 = smov (!%p412_p13, %s1420_s19), 79 }
  0x98   : > { %s1421_s29 = sshll.u32 %s2630_s19, 3  ;;  %431 = sbr.rel (%p1422_p4) target bundleno = 174 (0xae), region = 48 }
  0x99   : > { %s2181_s5 = scalar_lea.vmem %s2558_s8, %s1421_s29 }
  0x9d   : > { %v1914_v0 = vmov 0.0  }
  0x9e   : > { %432 = vst [vmem:[%s2183_s21] sm:$0xff] %v1914_v0  ;;  %433 = vst [vmem:[%s2183_s21 + $0x8] sm:$0xff] %v1914_v0 }
  0x9f   : > { %434 = vst [vmem:[%s2183_s21 + $0x10] sm:$0xff] %v1914_v0  ;;  %435 = vst [vmem:[%s2183_s21 + $0x18] sm:$0xff] %v1914_v0 }
  0xa0   : > { %436 = vst [vmem:[%s2183_s21 + $0x20] sm:$0xff] %v1914_v0  ;;  %437 = vst [vmem:[%s2183_s21 + $0x28] sm:$0xff] %v1914_v0 }
  0xa1   : > { %438 = vst [vmem:[%s2183_s21 + $0x30] sm:$0xff] %v1914_v0  ;;  %439 = vst [vmem:[%s2183_s21 + $0x38] sm:$0xff] %v1914_v0 }
  0xa2   : > { %440 = vst [vmem:[%s2183_s21 + $0x40] sm:$0xff] %v1914_v0  ;;  %441 = vst [vmem:[%s2183_s21 + $0x48] sm:$0xff] %v1914_v0 }
  0xa3   : > { %442 = vst [vmem:[%s2183_s21 + $0x50] sm:$0xff] %v1914_v0  ;;  %443 = vst [vmem:[%s2183_s21 + $0x58] sm:$0xff] %v1914_v0 }
  0xa4   : > { %444 = vst [vmem:[%s2183_s21 + $0x60] sm:$0xff] %v1914_v0  ;;  %445 = vst [vmem:[%s2183_s21 + $0x68] sm:$0xff] %v1914_v0 }
  0xa5   : > { %446 = vst [vmem:[%s2183_s21 + $0x70] sm:$0xff] %v1914_v0  ;;  %447 = vst [vmem:[%s2183_s21 + $0x78] sm:$0xff] %v1914_v0 }
  0xa6   : > { %448 = vst [vmem:[%s2183_s21 + $0x80] sm:$0xff] %v1914_v0  ;;  %449 = vst [vmem:[%s2183_s21 + $0x88] sm:$0xff] %v1914_v0 }
  0xa7   : > { %450 = vst [vmem:[%s2183_s21 + $0x90] sm:$0xff] %v1914_v0  ;;  %451 = vst [vmem:[%s2183_s21 + $0x98] sm:$0xff] %v1914_v0 }
  0xa8   : > { %452 = vst [vmem:[%s2183_s21 + $0xa0] sm:$0xff] %v1914_v0  ;;  %453 = vst [vmem:[%s2183_s21 + $0xa8] sm:$0xff] %v1914_v0 }
  0xa9   : > { %454 = vst [vmem:[%s2183_s21 + $0xb0] sm:$0xff] %v1914_v0  ;;  %455 = vst [vmem:[%s2183_s21 + $0xb8] sm:$0xff] %v1914_v0 }
  0xaa   : > { %456 = vst [vmem:[%s2183_s21 + $0xc0] sm:$0xff] %v1914_v0  ;;  %457 = vst [vmem:[%s2183_s21 + $0xc8] sm:$0xff] %v1914_v0 }
  0xab   : > { %458 = vst [vmem:[%s2183_s21 + $0xd0] sm:$0xff] %v1914_v0  ;;  %459 = vst [vmem:[%s2183_s21 + $0xd8] sm:$0xff] %v1914_v0 }
  0xac   : > { %460 = vst [vmem:[%s2183_s21 + $0xe0] sm:$0xff] %v1914_v0  ;;  %461 = vst [vmem:[%s2183_s21 + $0xe8] sm:$0xff] %v1914_v0 }
  0xad   : > { %462 = vst [vmem:[%s2183_s21 + $0xf0] sm:$0xff] %v1914_v0  ;;  %463 = vst [vmem:[%s2183_s21 + $0xf8] sm:$0xff] %v1914_v0 }
  0xae PF: > { %v1660_v1 = vld [vmem:[%s2150_s12 + $0x38] sm:$0xff]   ;;  %v465_v2 = vlaneseq  ;;  %v1661_v3 = vld [vmem:[%s2150_s12 + $0x30] sm:$0xff]   ;;  %v1662_v5 = vld [vmem:[%s2150_s12 + $0x28] sm:$0xff]   ;;  %v1915_v10 = vmov 1.0|1.0   ;;  %v1916_v44 = vmov 0  }
  0xaf   : > { %1491 = vmatprep.subr.bf16.mxu0 %v1660_v1  ;;  %v1663_v7 = vld [vmem:[%s2150_s12 + $0x20] sm:$0xff]   ;;  %v1670_v9 = vld [vmem:[%s2176_s25 + $0x74] ss:$8 sps:$4 sm:$0xff]   ;;  %v1668_v11 = vld [vmem:[%s2176_s25 + $0x70] ss:$8 sps:$4 sm:$0xff]   ;;  %875 = vmatprep.mubr.bf16.mxu1 %v1916_v44 }
  0xb0   : > { %v2219_v4 = vshrl.u32 %v465_v2, 7  ;;  %1492 = vmatpush3.bf16.msra.mxu0 %v1660_v1  ;;  %v2229_v8 = vld [vmem:[%s393_s13] ss:$0 sm:$0xff]  ;;  %v1664_v12 = vld [vmem:[%s2150_s12 + $0x18] sm:$0xff]   ;;  %1523 = vmatprep.subr.bf16.mxu1 %v1670_v9  ;;  %v1673_v13 = vld [vmem:[%s2176_s25 + $0x64] ss:$8 sps:$4 sm:$0xff]  }
  0xb1   : > { %1493 = vmatprep.subr.bf16.mxu0 %v1661_v3  ;;  %1531 = vmatpush1.bf16.msra.mxu1 %v1668_v11  ;;  %v1671_v14 = vld [vmem:[%s2176_s25 + $0x60] ss:$8 sps:$4 sm:$0xff]   ;;  %v1665_v15 = vld [vmem:[%s2150_s12 + $0x10] sm:$0xff]   ;;  %v1679_v19 = vld [vmem:[%s2176_s25 + $0x44] ss:$8 sps:$4 sm:$0xff]  }
  0xb2   : > { %v467_v6 = vadd.s32 8, %v2219_v4  ;;  %vm486_vm0 = vcmp.eq.s32.totalorder %v2219_v4, %v2229_v8  ;;  %1524 = vmatprep.subr.bf16.mxu1 %v1673_v13  ;;  %v1676_v16 = vld [vmem:[%s2176_s25 + $0x54] ss:$8 sps:$4 sm:$0xff]   ;;  %v1666_v17 = vld [vmem:[%s2150_s12 + $0x8] sm:$0xff]   ;;  %v1674_v18 = vld [vmem:[%s2176_s25 + $0x50] ss:$8 sps:$4 sm:$0xff]  }
  0xb3   : > { %v1677_v20 = vld [vmem:[%s2176_s25 + $0x40] ss:$8 sps:$4 sm:$0xff]   ;;  %v468_v22 = vadd.s32 16, %v2219_v4  ;;  %v469_v23 = vadd.s32 24, %v2219_v4  ;;  %v1682_v24 = vld [vmem:[%s2176_s25 + $0x34] ss:$8 sps:$4 sm:$0xff]  }
  0xb4   : > { %1494 = vmatpush3.bf16.msra.mxu0 %v1661_v3  ;;  %vm487_vm1 = vcmp.eq.s32.totalorder %v467_v6, %v2229_v8  ;;  %v1667_v21 = vld [vmem:[%s2150_s12] sm:$0xff]   ;;  %v470_v25 = vadd.s32 32, %v2219_v4  ;;  %v471_v26 = vadd.s32 40, %v2219_v4  ;;  %v1680_v27 = vld [vmem:[%s2176_s25 + $0x30] ss:$8 sps:$4 sm:$0xff]   ;;  %v472_v30 = vadd.s32 48, %v2219_v4 }
  0xb5   : > { %1495 = vmatprep.subr.bf16.mxu0 %v1662_v5  ;;  %vm1432_vm2 = vmpackc.low %vm487_vm1, %vm486_vm0  ;;  %1532 = vmatpush1.bf16.msra.mxu1 %v1671_v14  ;;  %vm488_vm3 = vcmp.eq.s32.totalorder %v468_v22, %v2229_v8  ;;  %vm489_vm4 = vcmp.eq.s32.totalorder %v469_v23, %v2229_v8  ;;  %v1685_v28 = vld [vmem:[%s2176_s25 + $0x24] ss:$8 sps:$4 sm:$0xff]   ;;  %v1683_v29 = vld [vmem:[%s2176_s25 + $0x20] ss:$8 sps:$4 sm:$0xff]   ;;  %v473_v31 = vadd.s32 56, %v2219_v4  ;;  %v474_v32 = vadd.s32 64, %v2219_v4 }
  0xb6   : > { %1507 = vmatprep.mubr.msk.bf16.mxu0 %vm1432_vm2, %v1915_v10  ;;  %1525 = vmatprep.subr.bf16.mxu1 %v1676_v16  ;;  %vm490_vm5 = vcmp.eq.s32.totalorder %v470_v25, %v2229_v8  ;;  %vm491_vm6 = vcmp.eq.s32.totalorder %v471_v26, %v2229_v8  ;;  %vm1434_vm7 = vmpackc.low %vm489_vm4, %vm488_vm3  ;;  %v475_v33 = vadd.s32 72, %v2219_v4  ;;  %vm492_vm9 = vcmp.eq.s32.totalorder %v472_v30, %v2229_v8  ;;  %v1688_v40 = vld [vmem:[%s2176_s25 + $0x14] ss:$8 sps:$4 sm:$0xff]   ;;  %v1686_v41 = vld [vmem:[%s2176_s25 + $0x10] ss:$8 sps:$4 sm:$0xff]   ;;  %s2291_s12 = sld [smem:[#allocation7 + %s2161_s26]] }
  0xb7   : > { %vm1436_vm8 = vmpackc.low %vm491_vm6, %vm490_vm5  ;;  %vm493_vm10 = vcmp.eq.s32.totalorder %v473_v31, %v2229_v8  ;;  %vm494_vm11 = vcmp.eq.s32.totalorder %v474_v32, %v2229_v8  ;;  %v476_v34 = vadd.s32 80, %v2219_v4  ;;  %v477_v35 = vadd.s32 88, %v2219_v4  ;;  %v1691_v42 = vld [vmem:[%s2176_s25 + $0x4] ss:$8 sps:$4 sm:$0xff]   ;;  %v1689_v43 = vld [vmem:[%s2176_s25] ss:$8 sps:$4 sm:$0xff]  }
  0xb8   : > { %1496 = vmatpush3.bf16.msra.mxu0 %v1662_v5  ;;  %vm495_vm12 = vcmp.eq.s32.totalorder %v475_v33, %v2229_v8  ;;  %vm1438_vm13 = vmpackc.low %vm493_vm10, %vm492_vm9  ;;  %v478_v36 = vadd.s32 96, %v2219_v4  ;;  %v479_v37 = vadd.s32 104, %v2219_v4  ;;  %v480_v38 = vadd.s32 112, %v2219_v4  ;;  %v687_v6 = vld [vmem:[%s2183_s21] sm:$0xff]  ;;  %v692_v22 = vld [vmem:[%s2183_s21 + $0x28] sm:$0xff] }
  0xb9   : > { %1497 = vmatprep.subr.bf16.mxu0 %v1663_v7  ;;  %1533 = vmatpush1.bf16.msra.mxu1 %v1674_v18  ;;  %vm1440_vm14 = vmpackc.low %vm495_vm12, %vm494_vm11  ;;  %vm496_vm15 = vcmp.eq.s32.totalorder %v476_v34, %v2229_v8  ;;  %vm497_vm0 = vcmp.eq.s32.totalorder %v477_v35, %v2229_v8  ;;  %v481_v39 = vadd.s32 120, %v2219_v4  ;;  %v696_v23 = vld [vmem:[%s2183_s21 + $0x48] sm:$0xff]  ;;  %v694_v34 = vld [vmem:[%s2183_s21 + $0x38] sm:$0xff] }
  0xba   : > { %1526 = vmatprep.subr.bf16.mxu1 %v1679_v19  ;;  %vm498_vm1 = vcmp.eq.s32.totalorder %v478_v36, %v2229_v8  ;;  %vm499_vm2 = vcmp.eq.s32.totalorder %v479_v37, %v2229_v8  ;;  %vm1442_vm3 = vmpackc.low %vm497_vm0, %vm496_vm15  ;;  %vm500_vm5 = vcmp.eq.s32.totalorder %v480_v38, %v2229_v8  ;;  %v698_v35 = vld [vmem:[%s2183_s21 + $0x58] sm:$0xff] }
  0xbb   : > { %vm1444_vm4 = vmpackc.low %vm499_vm2, %vm498_vm1  ;;  %vm501_vm6 = vcmp.eq.s32.totalorder %v481_v39, %v2229_v8  ;;  %v688_v8 = vld [vmem:[%s2183_s21 + $0x8] sm:$0xff] }
  0xbc   : > { %1498 = vmatpush3.bf16.msra.mxu0 %v1663_v7  ;;  %p1464_p9 = scmp.ne.s32.totalorder %s2291_s12, 1 }
  0xbd   : > { %1499 = vmatprep.subr.bf16.mxu0 %v1664_v12  ;;  %1534 = vmatpush1.bf16.msra.mxu1 %v1677_v20 }
  0xbe   : > { %1527 = vmatprep.subr.bf16.mxu1 %v1682_v24 }
  0xc0   : > { %1500 = vmatpush3.bf16.msra.mxu0 %v1664_v12 }
  0xc1   : > { %1501 = vmatprep.subr.bf16.mxu0 %v1665_v15  ;;  %1535 = vmatpush1.bf16.msra.mxu1 %v1680_v27 }
  0xc2   : > { %1528 = vmatprep.subr.bf16.mxu1 %v1685_v28 }
  0xc4   : > { %1502 = vmatpush3.bf16.msra.mxu0 %v1665_v15 }
  0xc5   : > { %1503 = vmatprep.subr.bf16.mxu0 %v1666_v17  ;;  %1536 = vmatpush1.bf16.msra.mxu1 %v1683_v29 }
  0xc6   : > { %1529 = vmatprep.subr.bf16.mxu1 %v1688_v40 }
  0xc8   : > { %1504 = vmatpush3.bf16.msra.mxu0 %v1666_v17  ;;  %v691_v17 = vld [vmem:[%s2183_s21 + $0x20] sm:$0xff] }
  0xc9   : > { %1505 = vmatprep.subr.bf16.mxu0 %v1667_v21  ;;  %1537 = vmatpush1.bf16.msra.mxu1 %v1686_v41 }
  0xca   : > { %1530 = vmatprep.subr.bf16.mxu1 %v1691_v42 }
  0xcc   : > { %1506 = vmatpush3.bf16.msra.mxu0 %v1667_v21 }
  0xcd   : > { %823 = vmatprep.subr.bf16.mxu0 %v1670_v9  ;;  %1538 = vmatpush1.bf16.msra.mxu1 %v1689_v43 }
  0xcf   : > { %1508 = vmatmul.mubr.msk.bf16.vlgmr.msra.gmra.mxu0 %vm1434_vm7, %v1915_v10  ;;  %vm1446_vm7 = vmpackc.low %vm501_vm6, %vm500_vm5 }
  0xd0   : > { %1511 = vmatprep.mubr.msk.bf16.mxu0 %vm1436_vm8, %v1915_v10  ;;  %824 = vmatpush1.bf16.msra.mxu0 %v1668_v11  ;;  %v689_v11 = vld [vmem:[%s2183_s21 + $0x10] sm:$0xff] }
  0xd1   : > { %825 = vmatprep.subr.bf16.mxu0 %v1673_v13 }
  0xd4   : > { %826 = vmatpush1.bf16.msra.mxu0 %v1671_v14  ;;  %v690_v14 = vld [vmem:[%s2183_s21 + $0x18] sm:$0xff] }
  0xd5   : > { %827 = vmatprep.subr.bf16.mxu0 %v1676_v16 }
  0xd7   : > { %1512 = vmatmul.mubr.msk.bf16.gmra.mxu0 %vm1438_vm13, %v1915_v10 }
  0xd8   : > { %1515 = vmatprep.mubr.msk.bf16.mxu0 %vm1440_vm14, %v1915_v10  ;;  %828 = vmatpush1.bf16.msra.mxu0 %v1674_v18  ;;  %v695_v18 = vld [vmem:[%s2183_s21 + $0x40] sm:$0xff] }
  0xd9   : > { %829 = vmatprep.subr.bf16.mxu0 %v1679_v19 }
  0xdc   : > { %830 = vmatpush1.bf16.msra.mxu0 %v1677_v20 }
  0xdd   : > { %831 = vmatprep.subr.bf16.mxu0 %v1682_v24 }
  0xdf   : > { %1516 = vmatmul.mubr.msk.bf16.gmra.mxu0 %vm1442_vm3, %v1915_v10 }
  0xe0   : > { %1519 = vmatprep.mubr.msk.bf16.mxu0 %vm1444_vm4, %v1915_v10  ;;  %832 = vmatpush1.bf16.msra.mxu0 %v1680_v27 }
  0xe1   : > { %833 = vmatprep.subr.bf16.mxu0 %v1685_v28  ;;  %v693_v28 = vld [vmem:[%s2183_s21 + $0x30] sm:$0xff] }
  0xe4   : > { %834 = vmatpush1.bf16.msra.mxu0 %v1683_v29  ;;  %v697_v29 = vld [vmem:[%s2183_s21 + $0x50] sm:$0xff] }
  0xe5   : > { %835 = vmatprep.subr.bf16.mxu0 %v1688_v40  ;;  %v699_v40 = vld [vmem:[%s2183_s21 + $0x60] sm:$0xff] }
  0xe7   : > { %1520 = vmatmul.mubr.msk.bf16.gmra.mxu0 %vm1446_vm7, %v1915_v10 }
  0xe8   : > { %836 = vmatpush1.bf16.msra.mxu0 %v1686_v41  ;;  %855 = vmatprep.mubr.bf16.mxu0 %v1916_v44 }
  0xe9   : > { %837 = vmatprep.subr.bf16.mxu0 %v1691_v42 }
  0xec   : > { %838 = vmatpush1.bf16.msra.mxu0 %v1689_v43 }
 0x18f   : > { %v1509_v45 = vpop.f32.mrf.mxu0 }
 0x191   : > { %v624_v46 = vpop.f32.mrf.mxu0 }
 0x193   : > { %v1510_v47 = vpop.f32.mrf.mxu0 }
 0x194   : > { %v720_v54 = vpack.c.bf16 %v1510_v47, %v1509_v45  ;;  %v701_v47 = vld [vmem:[%s2183_s21 + $0x70] sm:$0xff] }
 0x195   : > { %v627_v48 = vpop.f32.mrf.mxu0 }
 0x196   : > { %v719_v49 = vpack.c.bf16 %v627_v48, %v624_v46 }
 0x197   : > { %v1513_v50 = vpop.f32.mrf.mxu0 }
 0x198   : > { %856 = vmatmul.mubr.bf16.vlgmr.msra.gmra.mxu0 %v719_v49 }
 0x199   : > { %v640_v51 = vpop.f32.mrf.mxu0  ;;  %865 = vmatprep.mubr.bf16.mxu0 %v1916_v44 }
 0x19b   : > { %v1514_v52 = vpop.f32.mrf.mxu0 }
 0x19c   : > { %v722_v58 = vpack.c.bf16 %v1514_v52, %v1513_v50  ;;  %v702_v50 = vld [vmem:[%s2183_s21 + $0x78] sm:$0xff] }
 0x19d   : > { %v643_v53 = vpop.f32.mrf.mxu0 }
 0x19e   : > { %v721_v55 = vpack.c.bf16 %v643_v53, %v640_v51  ;;  %v703_v53 = vld [vmem:[%s2183_s21 + $0x80] sm:$0xff] }
 0x19f   : > { %v1517_v56 = vpop.f32.mrf.mxu0 }
 0x1a0   : > { %866 = vmatmul.mubr.bf16.gmra.mxu0 %v720_v54  ;;  %876 = vmatmul.mubr.bf16.vlgmr.msra.gmra.mxu1 %v721_v55 }
 0x1a1   : > { %885 = vmatprep.mubr.bf16.mxu1 %v1916_v44  ;;  %v656_v57 = vpop.f32.mrf.mxu0 }
 0x1a3   : > { %v1518_v59 = vpop.f32.mrf.mxu0 }
 0x1a4   : > { %v724_v0 = vpack.c.bf16 %v1518_v59, %v1517_v56  ;;  %v704_v56 = vld [vmem:[%s2183_s21 + $0x88] sm:$0xff]  ;;  %v705_v59 = vld [vmem:[%s2183_s21 + $0x90] sm:$0xff] }
 0x1a5   : > { %v659_v60 = vpop.f32.mrf.mxu0 }
 0x1a6   : > { %v723_v61 = vpack.c.bf16 %v659_v60, %v656_v57 }
 0x1a7   : > { %v1521_v62 = vpop.f32.mrf.mxu0 }
 0x1a8   : > { %886 = vmatmul.mubr.bf16.gmra.mxu1 %v722_v58 }
 0x1a9   : > { %895 = vmatprep.mubr.bf16.mxu1 %v1916_v44  ;;  %v672_v63 = vpop.f32.mrf.mxu0 }
 0x1ab   : > { %v1522_v1 = vpop.f32.mrf.mxu0 }
 0x1ac   : > { %v726_v5 = vpack.c.bf16 %v1522_v1, %v1521_v62  ;;  %v706_v62 = vld [vmem:[%s2183_s21 + $0x98] sm:$0xff]  ;;  %v707_v1 = vld [vmem:[%s2183_s21 + $0xa0] sm:$0xff] }
 0x1ad   : > { %v675_v2 = vpop.f32.mrf.mxu0 }
 0x1ae   : > { %v725_v3 = vpack.c.bf16 %v675_v2, %v672_v63 }
 0x1b0   : > { %896 = vmatmul.mubr.bf16.gmra.mxu1 %v723_v61 }
 0x1b1   : > { %905 = vmatprep.mubr.bf16.mxu1 %v1916_v44 }
 0x1b8   : > { %906 = vmatmul.mubr.bf16.gmra.mxu1 %v724_v0 }
 0x1b9   : > { %915 = vmatprep.mubr.bf16.mxu1 %v1916_v44 }
 0x1c0   : > { %916 = vmatmul.mubr.bf16.gmra.mxu1 %v725_v3 }
 0x1c1   : > { %925 = vmatprep.mubr.bf16.mxu1 %v1916_v44  ;;  %v700_v44 = vld [vmem:[%s2183_s21 + $0x68] sm:$0xff] }
 0x1c8   : > { %926 = vmatmul.mubr.bf16.gmra.mxu1 %v726_v5  ;;  %v708_v5 = vld [vmem:[%s2183_s21 + $0xa8] sm:$0xff] }
 0x258   : > { %v857_v7 = vpop.f32.mrf.mxu0 }
 0x259   : > { %v936_v9 = vadd.f32 %v857_v7, %v687_v6 }
 0x25a   : > { %v859_v10 = vpop.f32.mrf.mxu0 }
 0x25b   : > { %968 = vst [vmem:[%s2183_s21] sm:$0xff] %v936_v9  ;;  %v937_v12 = vadd.f32 %v859_v10, %v688_v8  ;;  %v709_v8 = vld [vmem:[%s2183_s21 + $0xb0] sm:$0xff] }
 0x25c   : > { %v861_v13 = vpop.f32.mrf.mxu0 }
 0x25d   : > { %969 = vst [vmem:[%s2183_s21 + $0x8] sm:$0xff] %v937_v12  ;;  %v938_v15 = vadd.f32 %v861_v13, %v689_v11  ;;  %v710_v11 = vld [vmem:[%s2183_s21 + $0xb8] sm:$0xff] }
 0x25e   : > { %v863_v16 = vpop.f32.mrf.mxu0 }
 0x25f   : > { %970 = vst [vmem:[%s2183_s21 + $0x10] sm:$0xff] %v938_v15  ;;  %v939_v19 = vadd.f32 %v863_v16, %v690_v14  ;;  %v711_v14 = vld [vmem:[%s2183_s21 + $0xc0] sm:$0xff] }
 0x260   : > { %v867_v20 = vpop.f32.mrf.mxu0  ;;  %v877_v21 = vpop.f32.mrf.mxu1 }
 0x261   : > { %971 = vst [vmem:[%s2183_s21 + $0x18] sm:$0xff] %v939_v19  ;;  %v940_v24 = vadd.f32 %v867_v20, %v691_v17  ;;  %v944_v25 = vadd.f32 %v877_v21, %v695_v18  ;;  %v712_v17 = vld [vmem:[%s2183_s21 + $0xc8] sm:$0xff]  ;;  %v713_v20 = vld [vmem:[%s2183_s21 + $0xd0] sm:$0xff] }
 0x262   : > { %v869_v26 = vpop.f32.mrf.mxu0  ;;  %v879_v27 = vpop.f32.mrf.mxu1 }
 0x263   : > { %972 = vst [vmem:[%s2183_s21 + $0x20] sm:$0xff] %v940_v24  ;;  %976 = vst [vmem:[%s2183_s21 + $0x40] sm:$0xff] %v944_v25  ;;  %v941_v30 = vadd.f32 %v869_v26, %v692_v22  ;;  %v945_v31 = vadd.f32 %v879_v27, %v696_v23  ;;  %v714_v23 = vld [vmem:[%s2183_s21 + $0xd8] sm:$0xff]  ;;  %v715_v26 = vld [vmem:[%s2183_s21 + $0xe0] sm:$0xff] }
 0x264   : > { %v871_v32 = vpop.f32.mrf.mxu0  ;;  %v881_v33 = vpop.f32.mrf.mxu1 }
 0x265   : > { %973 = vst [vmem:[%s2183_s21 + $0x28] sm:$0xff] %v941_v30  ;;  %977 = vst [vmem:[%s2183_s21 + $0x48] sm:$0xff] %v945_v31  ;;  %v942_v36 = vadd.f32 %v871_v32, %v693_v28  ;;  %v946_v37 = vadd.f32 %v881_v33, %v697_v29  ;;  %v716_v29 = vld [vmem:[%s2183_s21 + $0xe8] sm:$0xff]  ;;  %v717_v32 = vld [vmem:[%s2183_s21 + $0xf0] sm:$0xff] }
 0x266   : > { %v873_v38 = vpop.f32.mrf.mxu0  ;;  %v883_v39 = vpop.f32.mrf.mxu1 }
 0x267   : > { %974 = vst [vmem:[%s2183_s21 + $0x30] sm:$0xff] %v942_v36  ;;  %978 = vst [vmem:[%s2183_s21 + $0x50] sm:$0xff] %v946_v37  ;;  %v943_v41 = vadd.f32 %v873_v38, %v694_v34  ;;  %v947_v42 = vadd.f32 %v883_v39, %v698_v35  ;;  %v718_v35 = vld [vmem:[%s2183_s21 + $0xf8] sm:$0xff] }
 0x268   : > { %v887_v43 = vpop.f32.mrf.mxu1 }
 0x269   : > { %975 = vst [vmem:[%s2183_s21 + $0x38] sm:$0xff] %v943_v41  ;;  %979 = vst [vmem:[%s2183_s21 + $0x58] sm:$0xff] %v947_v42  ;;  %v948_v45 = vadd.f32 %v887_v43, %v699_v40 }
 0x26a   : > { %v889_v46 = vpop.f32.mrf.mxu1 }
 0x26b   : > { %980 = vst [vmem:[%s2183_s21 + $0x60] sm:$0xff] %v948_v45  ;;  %v949_v48 = vadd.f32 %v889_v46, %v700_v44 }
 0x26c   : > { %v891_v49 = vpop.f32.mrf.mxu1 }
 0x26d   : > { %981 = vst [vmem:[%s2183_s21 + $0x68] sm:$0xff] %v949_v48  ;;  %v950_v51 = vadd.f32 %v891_v49, %v701_v47 }
 0x26e   : > { %v893_v52 = vpop.f32.mrf.mxu1 }
 0x26f   : > { %982 = vst [vmem:[%s2183_s21 + $0x70] sm:$0xff] %v950_v51  ;;  %v951_v54 = vadd.f32 %v893_v52, %v702_v50 }
 0x270   : > { %v897_v55 = vpop.f32.mrf.mxu1 }
 0x271   : > { %983 = vst [vmem:[%s2183_s21 + $0x78] sm:$0xff] %v951_v54  ;;  %v952_v57 = vadd.f32 %v897_v55, %v703_v53 }
 0x272   : > { %v899_v58 = vpop.f32.mrf.mxu1 }
 0x273   : > { %984 = vst [vmem:[%s2183_s21 + $0x80] sm:$0xff] %v952_v57  ;;  %v953_v60 = vadd.f32 %v899_v58, %v704_v56 }
 0x274   : > { %v901_v61 = vpop.f32.mrf.mxu1 }
 0x275   : > { %985 = vst [vmem:[%s2183_s21 + $0x88] sm:$0xff] %v953_v60  ;;  %v954_v63 = vadd.f32 %v901_v61, %v705_v59 }
 0x276   : > { %v903_v0 = vpop.f32.mrf.mxu1 }
 0x277   : > { %986 = vst [vmem:[%s2183_s21 + $0x90] sm:$0xff] %v954_v63  ;;  %v955_v2 = vadd.f32 %v903_v0, %v706_v62 }
 0x278   : > { %v907_v3 = vpop.f32.mrf.mxu1 }
 0x279   : > { %987 = vst [vmem:[%s2183_s21 + $0x98] sm:$0xff] %v955_v2  ;;  %v956_v6 = vadd.f32 %v907_v3, %v707_v1 }
 0x27a   : > { %v909_v7 = vpop.f32.mrf.mxu1 }
 0x27b   : > { %988 = vst [vmem:[%s2183_s21 + $0xa0] sm:$0xff] %v956_v6  ;;  %v957_v9 = vadd.f32 %v909_v7, %v708_v5 }
 0x27c   : > { %v911_v10 = vpop.f32.mrf.mxu1 }
 0x27d   : > { %989 = vst [vmem:[%s2183_s21 + $0xa8] sm:$0xff] %v957_v9  ;;  %v958_v12 = vadd.f32 %v911_v10, %v709_v8 }
 0x27e   : > { %v913_v13 = vpop.f32.mrf.mxu1 }
 0x27f   : > { %990 = vst [vmem:[%s2183_s21 + $0xb0] sm:$0xff] %v958_v12  ;;  %v959_v15 = vadd.f32 %v913_v13, %v710_v11 }
 0x280   : > { %v917_v16 = vpop.f32.mrf.mxu1 }
 0x281   : > { %991 = vst [vmem:[%s2183_s21 + $0xb8] sm:$0xff] %v959_v15  ;;  %v960_v18 = vadd.f32 %v917_v16, %v711_v14 }
 0x282   : > { %v919_v19 = vpop.f32.mrf.mxu1 }
 0x283   : > { %992 = vst [vmem:[%s2183_s21 + $0xc0] sm:$0xff] %v960_v18  ;;  %v961_v21 = vadd.f32 %v919_v19, %v712_v17 }
 0x284   : > { %v921_v22 = vpop.f32.mrf.mxu1 }
 0x285   : > { %993 = vst [vmem:[%s2183_s21 + $0xc8] sm:$0xff] %v961_v21  ;;  %v962_v24 = vadd.f32 %v921_v22, %v713_v20 }
 0x286   : > { %v923_v25 = vpop.f32.mrf.mxu1 }
 0x287   : > { %994 = vst [vmem:[%s2183_s21 + $0xd0] sm:$0xff] %v962_v24  ;;  %v963_v27 = vadd.f32 %v923_v25, %v714_v23 }
 0x288   : > { %v927_v28 = vpop.f32.mrf.mxu1 }
 0x289   : > { %995 = vst [vmem:[%s2183_s21 + $0xd8] sm:$0xff] %v963_v27  ;;  %v964_v30 = vadd.f32 %v927_v28, %v715_v26 }
 0x28a   : > { %v929_v31 = vpop.f32.mrf.mxu1 }
 0x28b   : > { %996 = vst [vmem:[%s2183_s21 + $0xe0] sm:$0xff] %v964_v30  ;;  %v965_v33 = vadd.f32 %v929_v31, %v716_v29 }
 0x28c   : > { %v931_v34 = vpop.f32.mrf.mxu1 }
 0x28d   : > { %997 = vst [vmem:[%s2183_s21 + $0xe8] sm:$0xff] %v965_v33  ;;  %v966_v36 = vadd.f32 %v931_v34, %v717_v32  ;;  %1004 = sbr.rel (%p1464_p9) target bundleno = 821 (0x335), region = 52 }
 0x28e   : > { %v933_v37 = vpop.f32.mrf.mxu1 }
 0x28f   : > { %998 = vst [vmem:[%s2183_s21 + $0xf0] sm:$0xff] %v966_v36  ;;  %v967_v38 = vadd.f32 %v933_v37, %v718_v35 }
 0x291   : > { %999 = vst [vmem:[%s2183_s21 + $0xf8] sm:$0xff] %v967_v38 }
 0x292   : > { %v1039_v39 = vld [vmem:[%s2181_s5 + $0x10] sm:$0xff]  ;;  %v1037_v40 = vld [vmem:[%s2181_s5] sm:$0xff]  ;;  %v1917_v41 = vmov 0   ;;  %v1040_v42 = vld [vmem:[%s2181_s5 + $0x18] sm:$0xff]  ;;  %v1169_v56 = vsub.s32 0, %v2219_v4  ;;  %v1173_v57 = vsub.s32 1, %v2219_v4 }
 0x293   : > { %1693 = vset.pattern.permute.xlu1 %v1917_v41  ;;  %1692 = vset.pattern.permute.xlu0 %v1917_v41  ;;  %v1038_v43 = vld [vmem:[%s2181_s5 + $0x8] sm:$0xff]  ;;  %v1041_v45 = vld [vmem:[%s2181_s5 + $0x20] sm:$0xff]  ;;  %v1044_v46 = vld [vmem:[%s2181_s5 + $0x38] sm:$0xff] }
 0x294   : > { %1065 = vperm.xlu1 %1693, %v1039_v39   ;;  %1055 = vperm.xlu0 %1692, %v1037_v40   ;;  %v1042_v44 = vld [vmem:[%s2181_s5 + $0x28] sm:$0xff]  ;;  %v1043_v47 = vld [vmem:[%s2181_s5 + $0x30] sm:$0xff]  ;;  %v1045_v49 = vld [vmem:[%s2181_s5 + $0x40] sm:$0xff] }
 0x295   : > { %v1046_v48 = vld [vmem:[%s2181_s5 + $0x48] sm:$0xff]  ;;  %v1048_v50 = vld [vmem:[%s2181_s5 + $0x58] sm:$0xff]  ;;  %v1047_v51 = vld [vmem:[%s2181_s5 + $0x50] sm:$0xff] }
 0x296   : > { %v1050_v52 = vld [vmem:[%s2181_s5 + $0x68] sm:$0xff]  ;;  %v1049_v53 = vld [vmem:[%s2181_s5 + $0x60] sm:$0xff]  ;;  %v1052_v54 = vld [vmem:[%s2181_s5 + $0x78] sm:$0xff] }
 0x297   : > { %v1051_v55 = vld [vmem:[%s2181_s5 + $0x70] sm:$0xff]  ;;  %v1165_v58 = vld [vmem:[%s2559_s9] sm:$0x3]  ;;  %v1010_v60 = vld [vmem:[%s2183_s21 + $0x28] sm:$0xff] }
 0x298   : > { %1070 = vperm.xlu1 %1693, %v1040_v42   ;;  %1060 = vperm.xlu0 %1692, %v1038_v43   ;;  %v1009_v59 = vld [vmem:[%s2183_s21 + $0x20] sm:$0xff]  ;;  %v1006_v62 = vld [vmem:[%s2183_s21 + $0x8] sm:$0xff]  ;;  %v2383_v63 = vrot.slane %v1165_v58, %v1169_v56  ;;  %v2385_v0 = vrot.slane %v1165_v58, %v1173_v57  ;;  %v1011_v7 = vld [vmem:[%s2183_s21 + $0x30] sm:$0xff] }
 0x299   : > { %v1005_v61 = vld [vmem:[%s2183_s21] sm:$0xff]  ;;  %v1012_v12 = vld [vmem:[%s2183_s21 + $0x38] sm:$0xff]  ;;  %v1007_v13 = vld [vmem:[%s2183_s21 + $0x10] sm:$0xff] }
 0x29a   : > { %v1008_v14 = vld [vmem:[%s2183_s21 + $0x18] sm:$0xff]  ;;  %v1015_v21 = vld [vmem:[%s2183_s21 + $0x50] sm:$0xff]  ;;  %v1013_v27 = vld [vmem:[%s2183_s21 + $0x40] sm:$0xff] }
 0x29b   : > { %v1016_v26 = vld [vmem:[%s2183_s21 + $0x58] sm:$0xff]  ;;  %v1014_v28 = vld [vmem:[%s2183_s21 + $0x48] sm:$0xff]  ;;  %v1019_v43 = vld [vmem:[%s2183_s21 + $0x70] sm:$0xff] }
 0x29c   : > { %1080 = vperm.xlu1 %1693, %v1042_v44   ;;  %1075 = vperm.xlu0 %1692, %v1041_v45   ;;  %v1023_v57 = vld [vmem:[%s2183_s21 + $0x90] sm:$0xff] }
 0x2a0   : > { %1090 = vperm.xlu1 %1693, %v1044_v46   ;;  %1085 = vperm.xlu0 %1692, %v1043_v47  }
 0x2a4   : > { %1100 = vperm.xlu1 %1693, %v1046_v48   ;;  %1095 = vperm.xlu0 %1692, %v1045_v49   ;;  %v1020_v48 = vld [vmem:[%s2183_s21 + $0x78] sm:$0xff]  ;;  %v1017_v49 = vld [vmem:[%s2183_s21 + $0x60] sm:$0xff] }
 0x2a8   : > { %1110 = vperm.xlu1 %1693, %v1048_v50   ;;  %1105 = vperm.xlu0 %1692, %v1047_v51   ;;  %v1018_v50 = vld [vmem:[%s2183_s21 + $0x68] sm:$0xff] }
 0x2ac   : > { %1120 = vperm.xlu1 %1693, %v1050_v52   ;;  %1115 = vperm.xlu0 %1692, %v1049_v53  }
 0x2b0   : > { %1130 = vperm.xlu1 %1693, %v1052_v54   ;;  %1125 = vperm.xlu0 %1692, %v1051_v55  }
 0x30f   : > { %v1066_v1 = vpop.permute.xlu1 %1065  ;;  %v1056_v2 = vpop.permute.xlu0 %1055 }
 0x310   : > { %v1137_v3 = vmul.f32 %v1066_v1, %v1009_v59  ;;  %v1138_v5 = vmul.f32 %v1066_v1, %v1010_v60  ;;  %v1133_v4 = vmul.f32 %v1056_v2, %v1005_v61  ;;  %v1134_v6 = vmul.f32 %v1056_v2, %v1006_v62  ;;  %v1024_v62 = vld [vmem:[%s2183_s21 + $0x98] sm:$0xff]  ;;  %v1021_v1 = vld [vmem:[%s2183_s21 + $0x80] sm:$0xff]  ;;  %v1022_v2 = vld [vmem:[%s2183_s21 + $0x88] sm:$0xff] }
 0x312   : > { %v1181_v8 = vadd.f32 %v2383_v63, %v1137_v3  ;;  %v1182_v9 = vadd.f32 %v2385_v0, %v1138_v5  ;;  %v1177_v10 = vadd.f32 %v2383_v63, %v1133_v4  ;;  %v1178_v11 = vadd.f32 %v2385_v0, %v1134_v6 }
 0x313   : > { %v1071_v15 = vpop.permute.xlu1 %1070  ;;  %v1061_v16 = vpop.permute.xlu0 %1060 }
 0x314   : > { %v1213_v17 = vmax.f32 %v1181_v8, 0.0  ;;  %v1214_v18 = vmax.f32 %v1182_v9, 0.0  ;;  %v1209_v19 = vmax.f32 %v1177_v10, 0.0  ;;  %v1210_v20 = vmax.f32 %v1178_v11, 0.0 }
 0x315   : > { %v1139_v22 = vmul.f32 %v1071_v15, %v1011_v7  ;;  %v1140_v23 = vmul.f32 %v1071_v15, %v1012_v12  ;;  %v1135_v24 = vmul.f32 %v1061_v16, %v1007_v13  ;;  %v1136_v25 = vmul.f32 %v1061_v16, %v1008_v14 }
 0x316   : > { %1245 = vst [vmem:[%s2183_s21 + $0x20] sm:$0xff] %v1213_v17  ;;  %1246 = vst [vmem:[%s2183_s21 + $0x28] sm:$0xff] %v1214_v18  ;;  %v1027_v17 = vld [vmem:[%s2183_s21 + $0xb0] sm:$0xff] }
 0x317   : > { %1241 = vst [vmem:[%s2183_s21] sm:$0xff] %v1209_v19  ;;  %1242 = vst [vmem:[%s2183_s21 + $0x8] sm:$0xff] %v1210_v20  ;;  %v1183_v29 = vadd.f32 %v2383_v63, %v1139_v22  ;;  %v1184_v30 = vadd.f32 %v2385_v0, %v1140_v23  ;;  %v1179_v31 = vadd.f32 %v2383_v63, %v1135_v24  ;;  %v1081_v33 = vpop.permute.xlu1 %1080  ;;  %v1076_v34 = vpop.permute.xlu0 %1075  ;;  %v1028_v22 = vld [vmem:[%s2183_s21 + $0xb8] sm:$0xff]  ;;  %v1025_v23 = vld [vmem:[%s2183_s21 + $0xa0] sm:$0xff] }
 0x318   : > { %v1180_v32 = vadd.f32 %v2385_v0, %v1136_v25  ;;  %v1143_v35 = vmul.f32 %v1081_v33, %v1015_v21  ;;  %v1144_v36 = vmul.f32 %v1081_v33, %v1016_v26  ;;  %v1141_v37 = vmul.f32 %v1076_v34, %v1013_v27  ;;  %v1026_v24 = vld [vmem:[%s2183_s21 + $0xa8] sm:$0xff] }
 0x319   : > { %v1142_v38 = vmul.f32 %v1076_v34, %v1014_v28  ;;  %v1215_v39 = vmax.f32 %v1183_v29, 0.0  ;;  %v1216_v40 = vmax.f32 %v1184_v30, 0.0  ;;  %v1211_v41 = vmax.f32 %v1179_v31, 0.0  ;;  %v1031_v31 = vld [vmem:[%s2183_s21 + $0xd0] sm:$0xff] }
 0x31a   : > { %v1212_v42 = vmax.f32 %v1180_v32, 0.0  ;;  %v1187_v44 = vadd.f32 %v2383_v63, %v1143_v35  ;;  %v1188_v45 = vadd.f32 %v2385_v0, %v1144_v36  ;;  %v1185_v46 = vadd.f32 %v2383_v63, %v1141_v37  ;;  %v1032_v36 = vld [vmem:[%s2183_s21 + $0xd8] sm:$0xff]  ;;  %v1029_v37 = vld [vmem:[%s2183_s21 + $0xc0] sm:$0xff] }
 0x31b   : > { %v1186_v47 = vadd.f32 %v2385_v0, %v1142_v38  ;;  %1247 = vst [vmem:[%s2183_s21 + $0x30] sm:$0xff] %v1215_v39  ;;  %1248 = vst [vmem:[%s2183_s21 + $0x38] sm:$0xff] %v1216_v40  ;;  %v1091_v51 = vpop.permute.xlu1 %1090  ;;  %v1086_v52 = vpop.permute.xlu0 %1085  ;;  %v1030_v38 = vld [vmem:[%s2183_s21 + $0xc8] sm:$0xff] }
 0x31c   : > { %1243 = vst [vmem:[%s2183_s21 + $0x10] sm:$0xff] %v1211_v41  ;;  %1244 = vst [vmem:[%s2183_s21 + $0x18] sm:$0xff] %v1212_v42  ;;  %v1219_v53 = vmax.f32 %v1187_v44, 0.0  ;;  %v1220_v54 = vmax.f32 %v1188_v45, 0.0  ;;  %v1217_v55 = vmax.f32 %v1185_v46, 0.0  ;;  %v1147_v58 = vmul.f32 %v1091_v51, %v1019_v43 }
 0x31d   : > { %v1218_v56 = vmax.f32 %v1186_v47, 0.0  ;;  %v1148_v59 = vmul.f32 %v1091_v51, %v1020_v48  ;;  %v1145_v60 = vmul.f32 %v1086_v52, %v1017_v49  ;;  %v1146_v61 = vmul.f32 %v1086_v52, %v1018_v50 }
 0x31e   : > { %1251 = vst [vmem:[%s2183_s21 + $0x50] sm:$0xff] %v1219_v53  ;;  %1252 = vst [vmem:[%s2183_s21 + $0x58] sm:$0xff] %v1220_v54  ;;  %v1191_v3 = vadd.f32 %v2383_v63, %v1147_v58  ;;  %v1035_v53 = vld [vmem:[%s2183_s21 + $0xf0] sm:$0xff]  ;;  %v1036_v58 = vld [vmem:[%s2183_s21 + $0xf8] sm:$0xff] }
 0x31f   : > { %1249 = vst [vmem:[%s2183_s21 + $0x40] sm:$0xff] %v1217_v55  ;;  %1250 = vst [vmem:[%s2183_s21 + $0x48] sm:$0xff] %v1218_v56  ;;  %v1192_v5 = vadd.f32 %v2385_v0, %v1148_v59  ;;  %v1189_v4 = vadd.f32 %v2383_v63, %v1145_v60  ;;  %v1190_v6 = vadd.f32 %v2385_v0, %v1146_v61  ;;  %v1101_v7 = vpop.permute.xlu1 %1100  ;;  %v1096_v8 = vpop.permute.xlu0 %1095  ;;  %v1033_v59 = vld [vmem:[%s2183_s21 + $0xe0] sm:$0xff]  ;;  %v1034_v60 = vld [vmem:[%s2183_s21 + $0xe8] sm:$0xff] }
 0x320   : > { %v1151_v9 = vmul.f32 %v1101_v7, %v1023_v57  ;;  %v1152_v10 = vmul.f32 %v1101_v7, %v1024_v62  ;;  %v1149_v11 = vmul.f32 %v1096_v8, %v1021_v1  ;;  %v1150_v12 = vmul.f32 %v1096_v8, %v1022_v2 }
 0x321   : > { %v1223_v13 = vmax.f32 %v1191_v3, 0.0  ;;  %v1224_v14 = vmax.f32 %v1192_v5, 0.0  ;;  %v1221_v15 = vmax.f32 %v1189_v4, 0.0  ;;  %v1222_v16 = vmax.f32 %v1190_v6, 0.0 }
 0x322   : > { %v1195_v18 = vadd.f32 %v2383_v63, %v1151_v9  ;;  %v1196_v19 = vadd.f32 %v2385_v0, %v1152_v10  ;;  %v1193_v20 = vadd.f32 %v2383_v63, %v1149_v11  ;;  %v1194_v21 = vadd.f32 %v2385_v0, %v1150_v12 }
 0x323   : > { %1255 = vst [vmem:[%s2183_s21 + $0x70] sm:$0xff] %v1223_v13  ;;  %1256 = vst [vmem:[%s2183_s21 + $0x78] sm:$0xff] %v1224_v14  ;;  %v1111_v25 = vpop.permute.xlu1 %1110  ;;  %v1106_v26 = vpop.permute.xlu0 %1105 }
 0x324   : > { %1253 = vst [vmem:[%s2183_s21 + $0x60] sm:$0xff] %v1221_v15  ;;  %1254 = vst [vmem:[%s2183_s21 + $0x68] sm:$0xff] %v1222_v16  ;;  %v1227_v27 = vmax.f32 %v1195_v18, 0.0  ;;  %v1228_v28 = vmax.f32 %v1196_v19, 0.0  ;;  %v1225_v29 = vmax.f32 %v1193_v20, 0.0  ;;  %v1226_v30 = vmax.f32 %v1194_v21, 0.0 }
 0x325   : > { %v1155_v32 = vmul.f32 %v1111_v25, %v1027_v17  ;;  %v1156_v33 = vmul.f32 %v1111_v25, %v1028_v22  ;;  %v1153_v34 = vmul.f32 %v1106_v26, %v1025_v23  ;;  %v1154_v35 = vmul.f32 %v1106_v26, %v1026_v24 }
 0x326   : > { %1259 = vst [vmem:[%s2183_s21 + $0x90] sm:$0xff] %v1227_v27  ;;  %1260 = vst [vmem:[%s2183_s21 + $0x98] sm:$0xff] %v1228_v28 }
 0x327   : > { %1257 = vst [vmem:[%s2183_s21 + $0x80] sm:$0xff] %v1225_v29  ;;  %1258 = vst [vmem:[%s2183_s21 + $0x88] sm:$0xff] %v1226_v30  ;;  %v1199_v39 = vadd.f32 %v2383_v63, %v1155_v32  ;;  %v1200_v40 = vadd.f32 %v2385_v0, %v1156_v33  ;;  %v1197_v41 = vadd.f32 %v2383_v63, %v1153_v34  ;;  %v1121_v43 = vpop.permute.xlu1 %1120  ;;  %v1116_v44 = vpop.permute.xlu0 %1115 }
 0x328   : > { %v1198_v42 = vadd.f32 %v2385_v0, %v1154_v35  ;;  %v1159_v45 = vmul.f32 %v1121_v43, %v1031_v31  ;;  %v1160_v46 = vmul.f32 %v1121_v43, %v1032_v36  ;;  %v1157_v47 = vmul.f32 %v1116_v44, %v1029_v37 }
 0x329   : > { %v1158_v48 = vmul.f32 %v1116_v44, %v1030_v38  ;;  %v1231_v49 = vmax.f32 %v1199_v39, 0.0  ;;  %v1232_v50 = vmax.f32 %v1200_v40, 0.0  ;;  %v1229_v51 = vmax.f32 %v1197_v41, 0.0 }
 0x32a   : > { %v1230_v52 = vmax.f32 %v1198_v42, 0.0  ;;  %v1203_v54 = vadd.f32 %v2383_v63, %v1159_v45  ;;  %v1204_v55 = vadd.f32 %v2385_v0, %v1160_v46  ;;  %v1201_v56 = vadd.f32 %v2383_v63, %v1157_v47 }
 0x32b   : > { %v1202_v57 = vadd.f32 %v2385_v0, %v1158_v48  ;;  %1263 = vst [vmem:[%s2183_s21 + $0xb0] sm:$0xff] %v1231_v49  ;;  %1264 = vst [vmem:[%s2183_s21 + $0xb8] sm:$0xff] %v1232_v50  ;;  %v1131_v61 = vpop.permute.xlu1 %1130  ;;  %v1126_v62 = vpop.permute.xlu0 %1125 }
 0x32c   : > { %1261 = vst [vmem:[%s2183_s21 + $0xa0] sm:$0xff] %v1229_v51  ;;  %1262 = vst [vmem:[%s2183_s21 + $0xa8] sm:$0xff] %v1230_v52  ;;  %v1235_v1 = vmax.f32 %v1203_v54, 0.0  ;;  %v1236_v2 = vmax.f32 %v1204_v55, 0.0  ;;  %v1233_v3 = vmax.f32 %v1201_v56, 0.0  ;;  %v1163_v4 = vmul.f32 %v1131_v61, %v1035_v53 }
 0x32d   : > { %v1234_v5 = vmax.f32 %v1202_v57, 0.0  ;;  %v1164_v6 = vmul.f32 %v1131_v61, %v1036_v58  ;;  %v1161_v7 = vmul.f32 %v1126_v62, %v1033_v59  ;;  %v1162_v8 = vmul.f32 %v1126_v62, %v1034_v60 }
 0x32e   : > { %1267 = vst [vmem:[%s2183_s21 + $0xd0] sm:$0xff] %v1235_v1  ;;  %1268 = vst [vmem:[%s2183_s21 + $0xd8] sm:$0xff] %v1236_v2  ;;  %v1207_v9 = vadd.f32 %v2383_v63, %v1163_v4 }
 0x32f   : > { %1265 = vst [vmem:[%s2183_s21 + $0xc0] sm:$0xff] %v1233_v3  ;;  %1266 = vst [vmem:[%s2183_s21 + $0xc8] sm:$0xff] %v1234_v5  ;;  %v1208_v10 = vadd.f32 %v2385_v0, %v1164_v6  ;;  %v1205_v11 = vadd.f32 %v2383_v63, %v1161_v7  ;;  %v1206_v12 = vadd.f32 %v2385_v0, %v1162_v8 }
 0x330   : > { %v1239_v13 = vmax.f32 %v1207_v9, 0.0 }
 0x331   : > { %v1240_v14 = vmax.f32 %v1208_v10, 0.0  ;;  %v1237_v15 = vmax.f32 %v1205_v11, 0.0  ;;  %v1238_v16 = vmax.f32 %v1206_v12, 0.0 }
 0x332   : > { %1271 = vst [vmem:[%s2183_s21 + $0xf0] sm:$0xff] %v1239_v13 }
 0x333   : > { %1272 = vst [vmem:[%s2183_s21 + $0xf8] sm:$0xff] %v1240_v14  ;;  %1269 = vst [vmem:[%s2183_s21 + $0xe0] sm:$0xff] %v1237_v15 }
 0x334   : > { %1270 = vst [vmem:[%s2183_s21 + $0xe8] sm:$0xff] %v1238_v16 }
 0x335 PF: > { %p2594_p11 = scmp.ne.s32.totalorder %s2583_s16, 0  ;;  %s1291_s3 = sshll.u32 %s2183_s21, 4  ;;  %s2485_s3 = int_to_ptr.vmem [resolvable:$true] %s1291_s3 }
 0x336   : > { %s2595_s19 = sld [smem:[#allocation26_spill]]  ;;  %s2597_s11 = sand.u32 1, %s1868_s4  }
 0x337   : > { %s1543_s5 = scalar_select %p2594_p11, [#allocation4], [#allocation13] }
 0x338   : > { %s2632_s26 = smov (!%p2594_p11, %s2161_s26), 0  ;;  %s2494_s25 = scalar_lea.sflag [#allocation10], %s2597_s11 }
 0x339   : > { %s1283_s0 = sld [smem:[%s1543_s5 + %s2632_s26]]  ;;  %s1782_s29 = scalar_lea.vmem %s2485_s3, 4096 }
 0x33a   : > { %p1783_p12 = scmp.ne.s32.totalorder %s2485_s3, %s1782_s29  ;;  %s1918_s21 = smov [#allocation11]  }
 0x33b   : > { %s1786_s26 = sshll.u32 %s1918_s21, 4  ;;  %s1787_s26 = int_to_ptr.vmem [resolvable:$false] %s1786_s26 }
 0x33c   : > { %s2596_s27 = smov %s2595_s19  ;;  %p1784_p0 = pnand %p1783_p12, %p2594_p11 }
 0x33d   : > { %s1788_s10 = scalar_lea.vmem %s1787_s26, 8192  ;;  %p1789_p2 = scmp.lt.s32.totalorder %s2485_s3, %s1787_s26 }
 0x33e   : > { %p1785_p1 = pneg %p1784_p0  ;;  %p1790_p5 = scmp.lt.s32.totalorder %s1788_s10, %s1782_s29 }
 0x33f   : > { %s1474_s20 = sshll.u32 %s1283_s0, 12 }
 0x340   : > { %s2490_s2 = scalar_lea.hbm %s2595_s19, %s1474_s20  ;;  %p1791_p8 = por %p1790_p5, %p1789_p2 }
 0x342   : > { %p1792_p6 = pnand %p1791_p8, %p1785_p1 }
 0x344   : > { %1795 = shalt.err (!%p1792_p6)
}
 0x345   : > { %s1796_s24 = scalar_lea.hbm %s2490_s2, 4096  ;;  %s1800_s28 = scalar_lea.hbm %s2596_s27, 20480 }
 0x346   : > { %p1797_p3 = scmp.ne.s32.totalorder %s2490_s2, %s1796_s24  ;;  %p1801_p13 = scmp.lt.s32.totalorder %s2490_s2, %s2596_s27 }
 0x347   : > { %p1802_p4 = scmp.lt.s32.totalorder %s1800_s28, %s1796_s24 }
 0x348   : > { %p1798_p7 = pnand %p1797_p3, %p2594_p11 }
 0x349   : > { %p1803_p9 = por %p1802_p4, %p1801_p13 }
 0x34a   : > { %p1799_p10 = pneg %p1798_p7 }
 0x34c   : > { %p1804_p12 = pnand %p1803_p9, %p1799_p10 }
 0x34e   : > { %1807 = shalt.err (!%p1804_p12)
}
 0x34f   : > { %s1919_s0 = smov 256   ;;  %s1920_s20 = smov 16  }
 0x350   : > { %1545 = dma.vmem_to_hbm [thread:$0]  (%p2594_p11), %s2485_s3, 4096, %s2490_s2, %s2494_s25, %s1919_s0, %s1919_s0, %s1920_s20  }
 0x351 PF: > { %s2598_s30 = sld [smem:[#allocation18_spill]]  ;;  %p1558_p0 = scmp.ge.s32.totalorder %s1904_s1, 2 }
 0x352   : > { %s2599_s13 = sld [smem:[#allocation23_spill]] }
 0x357   : > { %s1306_s19 = sand.u32 1, %s2598_s30  }
 0x358   : > { %p2600_p1 = scmp.ne.s32.totalorder %s2599_s13, 0  ;;  %s1307_s11 = scalar_lea.sflag [#allocation10], %s1306_s19 }
 0x35a   : > { %p1554_p2 = pnand %p1558_p0, %p2600_p1 }
 0x35c   : > { %p1555_p5 = pneg %p1554_p2 }
 0x35e   : > { %1859 = dma.done.wait (%p1555_p5), %s1307_s11, 4096  }
 0x35f   : > { %1861 = vsyncadd (%p1555_p5), %s1307_s11, 4294963200  ;;  %s48_s1 = sadd.s32 1, %s1904_s1   ;;  %s2601_s29 = smov %s2106_s14 }
 0x360   : > { %p45_p8 = scmp.ge.s32.totalorder %s48_s1, 26   ;;  %s2602_s3 = sld [smem:[#allocation24_spill]] }
 0x361   : > { %s2603_s19 = sld [smem:[#allocation19_spill]]  ;;  %s2607_s14 = smov %s1868_s4 }
 0x362   : > { %s2604_s20 = sld [smem:[#allocation20_spill]]  ;;  %s2608_s4 = smov %s1872_s15 }
 0x363   : > { %s2605_s21 = sld [smem:[#allocation21_spill]]  ;;  %s2609_s15 = smov %s2601_s29 }
 0x364   : > { %s2606_s0 = sld [smem:[#allocation22_spill]]  ;;  %s2610_s16 = smov %s1880_s17 }
 0x365   : > { %s2611_s17 = smov %s1884_s18  ;;  %47 = sbr.rel (!%p45_p8) target bundleno = 66 (0x42), region = 102 }
 0x366   : > { %s2612_s18 = smov %s2602_s3 }
 0x36a   :  { %1312 = vsyncpa [#allocation9], 1 }
 0x36b   :  { %1314 = vsyncpa [#allocation9 + $0x1], 1 }
 0x36c   :  { %1315 = vsyncpa [#allocation10], 1 }
 0x36d   :  { %1317 = vsyncpa [#allocation10 + $0x1], 1 }

</bundles_post_ra>
